<compile_context>
chip_gen: v6e
topology: v6e:2x2x1
jax: 0.10.0
libtpu: 0.0.40
codegen_flags: <defaults>
</compile_context>

<pallas_src>
import math
import numpy as np
import jax
import jax.numpy as jnp
from jax.experimental import pallas as pl
from jax.experimental.pallas import tpu as pltpu


def _pick_batches_per_step(B, KT, target_rows=512):
    """Fold as many batches as possible into the matmul M-dim per grid step, subject to:
    (a) >= 2 grid steps when B >= 2 (v7x has 2 TensorCores; a size-1 grid idles one), and
    (b) rows-per-step <= target_rows (VMEM / pipelining headroom)."""
    best = 1
    for cand in range(1, B + 1):
        if B % cand:
            continue
        if cand * KT > max(target_rows, KT):
            continue
        if B >= 2 and (B // cand) < 2:
            continue
        best = cand
    return best


def make_sonet_kernel(BB, K, T, N, H, Fp):
    KT = K * T
    inv_scale = math.sqrt(K)          # coherence / (K ** -0.5)
    inv_sqrt2 = 1.0 / math.sqrt(2.0)

    def kernel(x_ref, atoms_ref, wbig_ref, bbig_ref, g_ref, gt_ref,
               w1_ref, b1_ref, w2_ref, b2_ref, wout_ref, bout_ref,
               ae_ref, out_ref):
        xb = x_ref[...]                                          # [BB, T, N]
        # Row-slab replication: row r = b*K*T + k*T + t holds x[b, t, :] (sublane concats only).
        slabs = []
        for b in range(BB):
            xb_b = xb[b]                                         # [T, N]
            for _ in range(K):
                slabs.append(xb_b)
        x_rep = slabs[0] if len(slabs) == 1 else jnp.concatenate(slabs, axis=0)   # [BB*KT, N]
        coeffs = x_rep * atoms_ref[...]                          # [BB*KT, N]

        # Single fused projection: columns = [qr | qi | kr | ki | v].  The hidden-axis rfft
        # (scaled by 1/sqrt(F)) is pre-folded into the q/k columns; trace(softmax(var_attn)) into
        # the v columns (both wrapper-side, parameter-only).  Kept f32 (feeds coherence).
        pv = jnp.dot(coeffs, wbig_ref[...],
                     preferred_element_type=jnp.float32) + bbig_ref[...]          # [RB, 4Fp+H]
        qr = pv[:, 0 * Fp:1 * Fp]
        qi = pv[:, 1 * Fp:2 * Fp]
        kr = pv[:, 2 * Fp:3 * Fp]
        ki = pv[:, 3 * Fp:4 * Fp]
        v = pv[:, 4 * Fp:4 * Fp + H]                                              # [RB, H]

        pxy_r = jnp.sum(qr * kr + qi * ki, axis=-1, keepdims=True)                # [RB, 1]
        pxy_i = jnp.sum(qi * kr - qr * ki, axis=-1, keepdims=True)
        pxx = jnp.sum(qr * qr + qi * qi, axis=-1, keepdims=True)
        pyy = jnp.sum(kr * kr + ki * ki, axis=-1, keepdims=True)
        coh = (pxy_r * pxy_r + pxy_i * pxy_i) * pl.reciprocal(
            jnp.maximum(pxx * pyy, 1e-6), approx=True)                            # [RB, 1]

        # Softmax over T within each (batch, atom) group of T consecutive rows.  Coherence lies in
        # [0, 1] (Cauchy-Schwarz) so the max-shift is unnecessary; group sums are two tiny
        # O(rows*groups) dots against the membership matrix (old O(rows^2) seg matrix removed).
        e = jnp.exp(coh * inv_scale)                                              # [RB, 1]
        gg = jnp.dot(gt_ref[...], e, preferred_element_type=jnp.float32)          # [groups, 1]
        gsum = jnp.dot(g_ref[...], gg, preferred_element_type=jnp.float32)        # [RB, 1]
        attn = e * pl.reciprocal(gsum, approx=True)

        out_var = attn * v                                                        # [RB, H]

        # Residual MLP (exact GELU); bf16 operands, f32 accumulation.
        h1 = jnp.dot(out_var.astype(jnp.bfloat16), w1_ref[...],
                     preferred_element_type=jnp.float32) + b1_ref[...]
        h1 = 0.5 * h1 * (1.0 + jax.lax.erf(h1 * inv_sqrt2))
        ov = out_var + jnp.dot(h1.astype(jnp.bfloat16), w2_ref[...],
                               preferred_element_type=jnp.float32) + b2_ref[...]   # [RB, H]

        # Output projection ([RB,H]@[H,N]) + Koopman mixing & atom window (pre-folded into ae)
        # + sum over atoms as K sublane-slab adds per batch.  No T-times-widened operands.
        z = jnp.dot(ov, wout_ref[...],
                    preferred_element_type=jnp.float32) + bout_ref[...]            # [RB, N]
        prod = z * ae_ref[...]                                                     # [RB, N]
        for b in range(BB):
            base = b * KT
            acc = prod[base:base + T, :]
            for k in range(1, K):
                acc = acc + prod[base + k * T:base + (k + 1) * T, :]
            out_ref[b] = acc                                                       # [T, N]

    return kernel


def sonet_block_pallas(x, freq_params, W_proj, b_proj, var_attn,
                       W1, b1, W2, b2, W_out, b_out, K_real,
                       *, n_atoms, hidden_dim, downsample_factor=1):
    x = jnp.asarray(x, jnp.float32)
    if downsample_factor > 1:                      # glue: AvgPool1d(kernel=stride=f)
        f = downsample_factor
        B0, T0, N0 = x.shape
        Tp = (T0 // f) * f
        x = x[:, :Tp].reshape(B0, T0 // f, f, N0).mean(axis=2)

    B, T, N = x.shape
    K, H = n_atoms, hidden_dim
    F = H // 2 + 1
    Fp = max(8, int(2 ** math.ceil(math.log2(F))))   # lane-padded rfft width (zeros past F)
    KT = K * T

    BB = _pick_batches_per_step(B, KT)               # batches folded into M per grid step
    S = B // BB                                      # grid steps (>= 2 when B >= 2, for v7x)
    RB = BB * KT                                     # rows per step, r = b*K*T + k*T + t
    NG = BB * K                                      # softmax groups per step
    hp = jax.lax.Precision.HIGHEST                   # wrapper-side weight folds in full f32

    # ---------- parameter-only preprocessing (traced jnp; nothing baked as Python constants) ----
    t = jnp.linspace(0.0, 1.0, T, dtype=jnp.float32)
    t2 = t * t
    alpha = freq_params[..., 0][..., None]
    beta = freq_params[..., 1][..., None]
    gamma = freq_params[..., 2][..., None]
    atoms = jnp.exp(-alpha * t2) * jnp.cos(beta * t + gamma * t2)        # [N, K, T]
    atoms_ktn = jnp.transpose(atoms, (1, 2, 0)).astype(jnp.float32)      # [K, T, N]
    atoms_flat = atoms_ktn.reshape(KT, N)                                # rows r = k*T + t
    atoms_bb = jnp.tile(atoms_flat, (BB, 1))                             # [RB, N]

    # De-interleave q/k/v (torch reshape(..., H, 3)); fold trace(softmax(var_attn)) into v.
    trace_c = jnp.trace(jax.nn.softmax(var_attn, axis=-1)).astype(jnp.float32)
    Wq = W_proj[0::3]; bq = b_proj[0::3]                                 # [H, N], [H]
    Wk = W_proj[1::3]; bk = b_proj[1::3]
    Wv = W_proj[2::3]; bv = b_proj[2::3]

    # rfft over the hidden axis as a real matrix [H, 2*Fp] (cos | -sin), 1/sqrt(F) folded so the
    # lane sums in the kernel equal the reference means over F; zero lanes past the true F.
    # Folded straight into the q/k projection columns (contraction over N instead of H, no
    # zero-padded block-diagonal DFT operand resident in VMEM).
    hh = np.arange(H, dtype=np.float64)[:, None]
    ff = np.arange(F, dtype=np.float64)[None, :]
    ang = 2.0 * np.pi * hh * ff / H
    Cr = np.zeros((H, Fp), np.float32); Cr[:, :F] = (np.cos(ang) / np.sqrt(F)).astype(np.float32)
    Ci = np.zeros((H, Fp), np.float32); Ci[:, :F] = (-np.sin(ang) / np.sqrt(F)).astype(np.float32)
    Cri = jnp.asarray(np.concatenate([Cr, Ci], axis=1))                  # [H, 2*Fp]

    Wq_spec = jnp.dot(jnp.transpose(Wq), Cri, precision=hp)              # [N, 2*Fp]
    Wk_spec = jnp.dot(jnp.transpose(Wk), Cri, precision=hp)
    bq_spec = jnp.dot(bq, Cri, precision=hp)                             # [2*Fp]
    bk_spec = jnp.dot(bk, Cri, precision=hp)
    Wbig = jnp.concatenate([Wq_spec, Wk_spec, jnp.transpose(Wv) * trace_c],
                           axis=1).astype(jnp.float32)                   # [N, 4*Fp + H]
    bbig = jnp.concatenate([bq_spec, bk_spec, bv * trace_c]
                           ).reshape(1, 4 * Fp + H).astype(jnp.float32)

    # Softmax group membership (groups = consecutive T-row blocks, one per (batch, atom)).
    G_np = np.kron(np.eye(NG, dtype=np.float32), np.ones((T, 1), np.float32))    # [RB, NG]
    G = jnp.asarray(G_np)
    GT = jnp.asarray(np.ascontiguousarray(G_np.T))                               # [NG, RB]

    W1t = jnp.transpose(W1).astype(jnp.bfloat16); b1r = b1.reshape(1, H).astype(jnp.float32)
    W2t = jnp.transpose(W2).astype(jnp.bfloat16); b2r = b2.reshape(1, H).astype(jnp.float32)
    # out_proj kept f32: its error lands directly on the output (2e-2 check margin).
    Woutt = jnp.transpose(W_out).astype(jnp.float32)                     # [H, N]
    boutr = b_out.reshape(1, N).astype(jnp.float32)

    # Koopman Re(U D U^H) applied to the atom table (parameter-only; exact since z is real):
    #   ae[k*T+t, n] = sum_j Re(K_mat)[j, k] * atoms[j, t, n]
    atoms_eff = jnp.einsum('jk,jtn->ktn', K_real.astype(jnp.float32), atoms_ktn,
                           precision=hp).reshape(KT, N)
    ae_bb = jnp.tile(atoms_eff, (BB, 1)).astype(jnp.float32)             # [RB, N]

    kernel = make_sonet_kernel(BB, K, T, N, H, Fp)
    const2 = lambda s: (0, 0)
    in_specs = [
        pl.BlockSpec((BB, T, N), lambda s: (s, 0, 0)),        # x (BB batches per grid step)
        pl.BlockSpec((RB, N), const2),                        # windowing atoms (b,k,t rows)
        pl.BlockSpec((N, 4 * Fp + H), const2),                # fused [q-spec | k-spec | v] weights
        pl.BlockSpec((1, 4 * Fp + H), const2),                # fused bias
        pl.BlockSpec((RB, NG), const2),                       # softmax group membership G
        pl.BlockSpec((NG, RB), const2),                       # G^T
        pl.BlockSpec((H, H), const2), pl.BlockSpec((1, H), const2),      # W1 (bf16), b1
        pl.BlockSpec((H, H), const2), pl.BlockSpec((1, H), const2),      # W2 (bf16), b2
        pl.BlockSpec((H, N), const2), pl.BlockSpec((1, N), const2),      # W_out, b_out
        pl.BlockSpec((RB, N), const2),                        # Koopman-mixed atom table
    ]

    out = pl.pallas_call(
        kernel,
        out_shape=jax.ShapeDtypeStruct((B, T, N), jnp.float32),
        grid=(S,),
        in_specs=in_specs,
        out_specs=pl.BlockSpec((BB, T, N), lambda s: (s, 0, 0)),
        compiler_params=pltpu.CompilerParams(dimension_semantics=("parallel",)),
    )(x, atoms_bb, Wbig, bbig, G, GT, W1t, b1r, W2t, b2r, Woutt, boutr, ae_bb)
    return out


def sonet_block_ref(x, freq_params, W_proj, b_proj, var_attn,
                    W1, b1, W2, b2, W_out, b_out, K_real, *, n_atoms, hidden_dim):
    """Pure-JAX reference mirroring the PyTorch forward (eval-mode dropout)."""
    B, T, N = x.shape
    K, H = n_atoms, hidden_dim
    t = jnp.linspace(0.0, 1.0, T, dtype=jnp.float32)
    t2 = t * t
    alpha = freq_params[..., 0][..., None]
    beta = freq_params[..., 1][..., None]
    gamma = freq_params[..., 2][..., None]
    atoms = jnp.exp(-alpha * t2) * jnp.cos(beta * t + gamma * t2)        # [N,K,T]
    coeffs = jnp.einsum('btn,nkt->bktn', x, atoms)                        # [B,K,T,N]
    qkv = jnp.einsum('bktn,on->bkto', coeffs, W_proj) + b_proj            # [B,K,T,3H]
    qkv = qkv.reshape(B, K, T, H, 3)
    q, kk, v = qkv[..., 0], qkv[..., 1], qkv[..., 2]                      # [B,K,T,H]
    q = jnp.transpose(q, (0, 1, 3, 2))                                    # [B,K,H,T]
    kk = jnp.transpose(kk, (0, 1, 3, 2))
    v = jnp.transpose(v, (0, 1, 3, 2))
    Qf = jnp.fft.rfft(q, axis=2)
    Kf = jnp.fft.rfft(kk, axis=2)
    Pxy = jnp.mean(Qf * jnp.conj(Kf), axis=-2)
    Pxx = jnp.mean(Qf * jnp.conj(Qf), axis=-2)
    Pyy = jnp.mean(Kf * jnp.conj(Kf), axis=-2)
    coherence = jnp.abs(Pxy) ** 2 / jnp.maximum(jnp.abs(Pxx) * jnp.abs(Pyy), 1e-6)
    attn = jax.nn.softmax(coherence / (K ** -0.5), axis=-1)               # [B,K,T]
    out_time = attn[:, :, None, :] * v                                     # [B,K,H,T]
    out_time = jnp.transpose(out_time, (0, 3, 1, 2)).reshape(B, T, K * H)
    out_var = out_time * jnp.trace(jax.nn.softmax(var_attn, axis=-1))
    out_var = out_var.reshape(B, T, K, H)
    h1 = jax.nn.gelu(out_var @ W1.T + b1, approximate=False)
    out = out_var + (h1 @ W2.T + b2)
    out = out @ W_out.T + b_out                                            # [B,T,K,N]
    z = jnp.transpose(out, (0, 2, 1, 3))                                   # [B,K,T,N]
    z_e = jnp.einsum('jk,bktn->bjtn', K_real, z)                           # Re(K_mat) @ real z
    recon = jnp.einsum('bktn,nkt->btn', z_e, atoms)
    return recon


if __name__ == "__main__":
    B, T, N, K, H = 2, 16, 8, 4, 16   # batch, seq_len, d_model, n_atoms, hidden_dim

    key = jax.random.PRNGKey(0)
    keys = jax.random.split(key, 12)
    x = jax.random.normal(keys[0], (B, T, N), jnp.float32)

    # deterministic synthetic parameters (shapes from the module __init__)
    freq_params = jax.random.normal(keys[1], (N, K, 3), jnp.float32)
    W_proj = jax.random.normal(keys[2], (3 * H, N), jnp.float32) / np.sqrt(N)
    b_proj = 0.02 * jax.random.normal(keys[3], (3 * H,), jnp.float32)
    var_attn = jnp.eye(N, dtype=jnp.float32)
    W1 = jax.random.normal(keys[4], (H, H), jnp.float32) / np.sqrt(H)
    b1 = 0.02 * jax.random.normal(keys[5], (H,), jnp.float32)
    W2 = jax.random.normal(keys[6], (H, H), jnp.float32) / np.sqrt(H)
    b2 = 0.02 * jax.random.normal(keys[7], (H,), jnp.float32)
    W_out = jax.random.normal(keys[8], (N, H), jnp.float32) / np.sqrt(H)
    b_out = 0.02 * jax.random.normal(keys[9], (N,), jnp.float32)

    # Koopman parameters: complex U (column-normalized) and theta; QR + diag-exp done in numpy.
    # TODO(synk): complex QR / complex matmul have no Pallas equivalent; only Re(U D U^H) reaches
    #             the kernel (mathematically exact since the Koopman input has zero imaginary part).
    u_re = np.asarray(jax.random.normal(keys[10], (K, K), jnp.float32))
    u_im = np.asarray(jax.random.normal(keys[11], (K, K), jnp.float32))
    theta = np.asarray(jax.random.uniform(jax.random.fold_in(key, 99), (K,), jnp.float32))
    U0 = (u_re + 1j * u_im).astype(np.complex64)
    U0 = U0 / np.linalg.norm(U0, axis=0, keepdims=True)
    Qm, _ = np.linalg.qr(U0)
    Dm = np.diag(np.exp(1j * theta.astype(np.complex64)))
    K_mat = Qm @ Dm @ Qm.conj().T
    K_real = jnp.asarray(np.real(K_mat).astype(np.float32))

    out = sonet_block_pallas(x, freq_params, W_proj, b_proj, var_attn,
                             W1, b1, W2, b2, W_out, b_out, K_real,
                             n_atoms=K, hidden_dim=H, downsample_factor=1)
    out = jax.block_until_ready(out)

    ref = sonet_block_ref(x, freq_params, W_proj, b_proj, var_attn,
                          W1, b1, W2, b2, W_out, b_out, K_real,
                          n_atoms=K, hidden_dim=H)
    ref = jax.block_until_ready(ref)

    assert out.shape == (B, T, N)
    err = float(jnp.max(jnp.abs(out - ref) / (1.0 + jnp.abs(ref))))
    assert err < 2e-2, f"mismatch vs reference: {err}"
    print("KERNEL_OK")
</pallas_src>

<mosaic_0001>
module attributes {stable_mosaic.version = 11 : i64} {
  func.func @kernel(%arg0: i32, %arg1: memref<1x16x8xf32, #tpu.memory_space<vmem>>, %arg2: memref<64x8xf32, #tpu.memory_space<vmem>>, %arg3: memref<8x80xf32, #tpu.memory_space<vmem>>, %arg4: memref<1x80xf32, #tpu.memory_space<vmem>>, %arg5: memref<64x4xf32, #tpu.memory_space<vmem>>, %arg6: memref<4x64xf32, #tpu.memory_space<vmem>>, %arg7: memref<16x16xbf16, #tpu.memory_space<vmem>>, %arg8: memref<1x16xf32, #tpu.memory_space<vmem>>, %arg9: memref<16x16xbf16, #tpu.memory_space<vmem>>, %arg10: memref<1x16xf32, #tpu.memory_space<vmem>>, %arg11: memref<16x8xf32, #tpu.memory_space<vmem>>, %arg12: memref<1x8xf32, #tpu.memory_space<vmem>>, %arg13: memref<64x8xf32, #tpu.memory_space<vmem>>, %arg14: memref<1x16x8xf32, #tpu.memory_space<vmem>>) attributes {dimension_semantics = [#tpu.dimension_semantics<parallel>], iteration_bounds = array<i64: 2>, scalar_prefetch = 0 : i64, scratch_operands = 0 : i64, tpu.core_type = #tpu.core_type<tc>, window_params = [{transform_indices = @transform_0, window_bounds = array<i64: 1, 16, 8>}, {pipeline_mode = #tpu.pipeline_mode<synchronous>, transform_indices = @transform_1, window_bounds = array<i64: 64, 8>}, {pipeline_mode = #tpu.pipeline_mode<synchronous>, transform_indices = @transform_2, window_bounds = array<i64: 8, 80>}, {pipeline_mode = #tpu.pipeline_mode<synchronous>, transform_indices = @transform_3, window_bounds = array<i64: 1, 80>}, {pipeline_mode = #tpu.pipeline_mode<synchronous>, transform_indices = @transform_4, window_bounds = array<i64: 64, 4>}, {pipeline_mode = #tpu.pipeline_mode<synchronous>, transform_indices = @transform_5, window_bounds = array<i64: 4, 64>}, {pipeline_mode = #tpu.pipeline_mode<synchronous>, transform_indices = @transform_6, window_bounds = array<i64: 16, 16>}, {pipeline_mode = #tpu.pipeline_mode<synchronous>, transform_indices = @transform_7, window_bounds = array<i64: 1, 16>}, {pipeline_mode = #tpu.pipeline_mode<synchronous>, transform_indices = @transform_8, window_bounds = array<i64: 16, 16>}, {pipeline_mode = #tpu.pipeline_mode<synchronous>, transform_indices = @transform_9, window_bounds = array<i64: 1, 16>}, {pipeline_mode = #tpu.pipeline_mode<synchronous>, transform_indices = @transform_10, window_bounds = array<i64: 16, 8>}, {pipeline_mode = #tpu.pipeline_mode<synchronous>, transform_indices = @transform_11, window_bounds = array<i64: 1, 8>}, {pipeline_mode = #tpu.pipeline_mode<synchronous>, transform_indices = @transform_12, window_bounds = array<i64: 64, 8>}, {transform_indices = @transform_13, window_bounds = array<i64: 1, 16, 8>}]} {
    %c0 = arith.constant 0 : index
    %c0_0 = arith.constant 0 : index
    %c0_1 = arith.constant 0 : index
    %0 = vector.load %arg1[%c0, %c0_0, %c0_1] : memref<1x16x8xf32, #tpu.memory_space<vmem>>, vector<1x16x8xf32>
    %1 = vector.shape_cast %0 : vector<1x16x8xf32> to vector<16x8xf32>
    %2 = tpu.concatenate %1, %1, %1, %1 in 0 : vector<16x8xf32>, vector<16x8xf32>, vector<16x8xf32>, vector<16x8xf32> -> vector<64x8xf32>
    %c0_2 = arith.constant 0 : index
    %c0_3 = arith.constant 0 : index
    %3 = vector.load %arg2[%c0_2, %c0_3] : memref<64x8xf32, #tpu.memory_space<vmem>>, vector<64x8xf32>
    %4 = arith.mulf %2, %3 : vector<64x8xf32>
    %c0_4 = arith.constant 0 : index
    %c0_5 = arith.constant 0 : index
    %5 = vector.load %arg3[%c0_4, %c0_5] : memref<8x80xf32, #tpu.memory_space<vmem>>, vector<8x80xf32>
    %cst = arith.constant dense<0.000000e+00> : vector<64x80xf32>
    %6 = tpu.matmul %4, %5, %cst {dimension_numbers = #tpu.dot_dimension_numbers<[1], [0], [0], [1], [0, 0, 1, 1], [], []>} : vector<64x8xf32>, vector<8x80xf32>, vector<64x80xf32> -> vector<64x80xf32>
    %c0_6 = arith.constant 0 : index
    %c0_7 = arith.constant 0 : index
    %7 = vector.load %arg4[%c0_6, %c0_7] : memref<1x80xf32, #tpu.memory_space<vmem>>, vector<1x80xf32>
    %8 = vector.broadcast %7 : vector<1x80xf32> to vector<64x80xf32>
    %9 = arith.addf %6, %8 : vector<64x80xf32>
    %10 = vector.extract_strided_slice %9 {offsets = [0, 0], sizes = [64, 16], strides = [1, 1]} : vector<64x80xf32> to vector<64x16xf32>
    %11 = vector.extract_strided_slice %9 {offsets = [0, 16], sizes = [64, 16], strides = [1, 1]} : vector<64x80xf32> to vector<64x16xf32>
    %12 = vector.extract_strided_slice %9 {offsets = [0, 32], sizes = [64, 16], strides = [1, 1]} : vector<64x80xf32> to vector<64x16xf32>
    %13 = vector.extract_strided_slice %9 {offsets = [0, 48], sizes = [64, 16], strides = [1, 1]} : vector<64x80xf32> to vector<64x16xf32>
    %14 = vector.extract_strided_slice %9 {offsets = [0, 64], sizes = [64, 16], strides = [1, 1]} : vector<64x80xf32> to vector<64x16xf32>
    %15 = arith.mulf %10, %12 : vector<64x16xf32>
    %16 = arith.mulf %11, %13 : vector<64x16xf32>
    %17 = arith.addf %15, %16 : vector<64x16xf32>
    %cst_8 = arith.constant dense<0.000000e+00> : vector<64xf32>
    %18 = vector.multi_reduction <add>, %17, %cst_8 [1] : vector<64x16xf32> to vector<64xf32>
    %19 = vector.shape_cast %18 : vector<64xf32> to vector<64x1xf32>
    %20 = arith.mulf %11, %12 : vector<64x16xf32>
    %21 = arith.mulf %10, %13 : vector<64x16xf32>
    %22 = arith.subf %20, %21 : vector<64x16xf32>
    %cst_9 = arith.constant dense<0.000000e+00> : vector<64xf32>
    %23 = vector.multi_reduction <add>, %22, %cst_9 [1] : vector<64x16xf32> to vector<64xf32>
    %24 = vector.shape_cast %23 : vector<64xf32> to vector<64x1xf32>
    %25 = arith.mulf %10, %10 : vector<64x16xf32>
    %26 = arith.mulf %11, %11 : vector<64x16xf32>
    %27 = arith.addf %25, %26 : vector<64x16xf32>
    %cst_10 = arith.constant dense<0.000000e+00> : vector<64xf32>
    %28 = vector.multi_reduction <add>, %27, %cst_10 [1] : vector<64x16xf32> to vector<64xf32>
    %29 = vector.shape_cast %28 : vector<64xf32> to vector<64x1xf32>
    %30 = arith.mulf %12, %12 : vector<64x16xf32>
    %31 = arith.mulf %13, %13 : vector<64x16xf32>
    %32 = arith.addf %30, %31 : vector<64x16xf32>
    %cst_11 = arith.constant dense<0.000000e+00> : vector<64xf32>
    %33 = vector.multi_reduction <add>, %32, %cst_11 [1] : vector<64x16xf32> to vector<64xf32>
    %34 = vector.shape_cast %33 : vector<64xf32> to vector<64x1xf32>
    %35 = arith.mulf %19, %19 : vector<64x1xf32>
    %36 = arith.mulf %24, %24 : vector<64x1xf32>
    %37 = arith.addf %35, %36 : vector<64x1xf32>
    %38 = arith.mulf %29, %34 : vector<64x1xf32>
    %cst_12 = arith.constant 9.99999997E-7 : f32
    %39 = vector.broadcast %cst_12 : f32 to vector<64x1xf32>
    %40 = arith.maximumf %38, %39 : vector<64x1xf32>
    %41 = tpu.reciprocal %40 {approx = true} : vector<64x1xf32> -> vector<64x1xf32>
    %42 = arith.mulf %37, %41 : vector<64x1xf32>
    %cst_13 = arith.constant 2.000000e+00 : f32
    %43 = vector.broadcast %cst_13 : f32 to vector<64x1xf32>
    %44 = arith.mulf %42, %43 : vector<64x1xf32>
    %45 = math.exp %44 : vector<64x1xf32>
    %c0_14 = arith.constant 0 : index
    %c0_15 = arith.constant 0 : index
    %46 = vector.load %arg6[%c0_14, %c0_15] : memref<4x64xf32, #tpu.memory_space<vmem>>, vector<4x64xf32>
    %cst_16 = arith.constant dense<0.000000e+00> : vector<4x1xf32>
    %47 = tpu.matmul %46, %45, %cst_16 {dimension_numbers = #tpu.dot_dimension_numbers<[1], [0], [0], [1], [0, 0, 1, 1], [], []>} : vector<4x64xf32>, vector<64x1xf32>, vector<4x1xf32> -> vector<4x1xf32>
    %c0_17 = arith.constant 0 : index
    %c0_18 = arith.constant 0 : index
    %48 = vector.load %arg5[%c0_17, %c0_18] : memref<64x4xf32, #tpu.memory_space<vmem>>, vector<64x4xf32>
    %cst_19 = arith.constant dense<0.000000e+00> : vector<64x1xf32>
    %49 = tpu.matmul %48, %47, %cst_19 {dimension_numbers = #tpu.dot_dimension_numbers<[1], [0], [0], [1], [0, 0, 1, 1], [], []>} : vector<64x4xf32>, vector<4x1xf32>, vector<64x1xf32> -> vector<64x1xf32>
    %50 = tpu.reciprocal %49 {approx = true} : vector<64x1xf32> -> vector<64x1xf32>
    %51 = arith.mulf %45, %50 : vector<64x1xf32>
    %52 = vector.broadcast %51 : vector<64x1xf32> to vector<64x16xf32>
    %53 = arith.mulf %52, %14 : vector<64x16xf32>
    %54 = arith.truncf %53 : vector<64x16xf32> to vector<64x16xbf16>
    %c0_20 = arith.constant 0 : index
    %c0_21 = arith.constant 0 : index
    %55 = vector.load %arg7[%c0_20, %c0_21] : memref<16x16xbf16, #tpu.memory_space<vmem>>, vector<16x16xbf16>
    %cst_22 = arith.constant dense<0.000000e+00> : vector<64x16xf32>
    %56 = tpu.matmul %54, %55, %cst_22 {dimension_numbers = #tpu.dot_dimension_numbers<[1], [0], [0], [1], [0, 0, 1, 1], [], []>} : vector<64x16xbf16>, vector<16x16xbf16>, vector<64x16xf32> -> vector<64x16xf32>
    %c0_23 = arith.constant 0 : index
    %c0_24 = arith.constant 0 : index
    %57 = vector.load %arg8[%c0_23, %c0_24] : memref<1x16xf32, #tpu.memory_space<vmem>>, vector<1x16xf32>
    %58 = vector.broadcast %57 : vector<1x16xf32> to vector<64x16xf32>
    %59 = arith.addf %56, %58 : vector<64x16xf32>
    %cst_25 = arith.constant 5.000000e-01 : f32
    %60 = vector.broadcast %cst_25 : f32 to vector<64x16xf32>
    %61 = arith.mulf %60, %59 : vector<64x16xf32>
    %cst_26 = arith.constant 0.707106769 : f32
    %62 = vector.broadcast %cst_26 : f32 to vector<64x16xf32>
    %63 = arith.mulf %59, %62 : vector<64x16xf32>
    %64 = math.erf %63 : vector<64x16xf32>
    %cst_27 = arith.constant 1.000000e+00 : f32
    %65 = vector.broadcast %cst_27 : f32 to vector<64x16xf32>
    %66 = arith.addf %65, %64 : vector<64x16xf32>
    %67 = arith.mulf %61, %66 : vector<64x16xf32>
    %68 = arith.truncf %67 : vector<64x16xf32> to vector<64x16xbf16>
    %c0_28 = arith.constant 0 : index
    %c0_29 = arith.constant 0 : index
    %69 = vector.load %arg9[%c0_28, %c0_29] : memref<16x16xbf16, #tpu.memory_space<vmem>>, vector<16x16xbf16>
    %cst_30 = arith.constant dense<0.000000e+00> : vector<64x16xf32>
    %70 = tpu.matmul %68, %69, %cst_30 {dimension_numbers = #tpu.dot_dimension_numbers<[1], [0], [0], [1], [0, 0, 1, 1], [], []>} : vector<64x16xbf16>, vector<16x16xbf16>, vector<64x16xf32> -> vector<64x16xf32>
    %71 = arith.addf %53, %70 : vector<64x16xf32>
    %c0_31 = arith.constant 0 : index
    %c0_32 = arith.constant 0 : index
    %72 = vector.load %arg10[%c0_31, %c0_32] : memref<1x16xf32, #tpu.memory_space<vmem>>, vector<1x16xf32>
    %73 = vector.broadcast %72 : vector<1x16xf32> to vector<64x16xf32>
    %74 = arith.addf %71, %73 : vector<64x16xf32>
    %c0_33 = arith.constant 0 : index
    %c0_34 = arith.constant 0 : index
    %75 = vector.load %arg11[%c0_33, %c0_34] : memref<16x8xf32, #tpu.memory_space<vmem>>, vector<16x8xf32>
    %cst_35 = arith.constant dense<0.000000e+00> : vector<64x8xf32>
    %76 = tpu.matmul %74, %75, %cst_35 {dimension_numbers = #tpu.dot_dimension_numbers<[1], [0], [0], [1], [0, 0, 1, 1], [], []>} : vector<64x16xf32>, vector<16x8xf32>, vector<64x8xf32> -> vector<64x8xf32>
    %c0_36 = arith.constant 0 : index
    %c0_37 = arith.constant 0 : index
    %77 = vector.load %arg12[%c0_36, %c0_37] : memref<1x8xf32, #tpu.memory_space<vmem>>, vector<1x8xf32>
    %78 = vector.broadcast %77 : vector<1x8xf32> to vector<64x8xf32>
    %79 = arith.addf %76, %78 : vector<64x8xf32>
    %c0_38 = arith.constant 0 : index
    %c0_39 = arith.constant 0 : index
    %80 = vector.load %arg13[%c0_38, %c0_39] : memref<64x8xf32, #tpu.memory_space<vmem>>, vector<64x8xf32>
    %81 = arith.mulf %79, %80 : vector<64x8xf32>
    %82 = vector.extract_strided_slice %81 {offsets = [0, 0], sizes = [16, 8], strides = [1, 1]} : vector<64x8xf32> to vector<16x8xf32>
    %83 = vector.extract_strided_slice %81 {offsets = [16, 0], sizes = [16, 8], strides = [1, 1]} : vector<64x8xf32> to vector<16x8xf32>
    %84 = arith.addf %82, %83 : vector<16x8xf32>
    %85 = vector.extract_strided_slice %81 {offsets = [32, 0], sizes = [16, 8], strides = [1, 1]} : vector<64x8xf32> to vector<16x8xf32>
    %86 = arith.addf %84, %85 : vector<16x8xf32>
    %87 = vector.extract_strided_slice %81 {offsets = [48, 0], sizes = [16, 8], strides = [1, 1]} : vector<64x8xf32> to vector<16x8xf32>
    %88 = arith.addf %86, %87 : vector<16x8xf32>
    %c0_40 = arith.constant 0 : index
    %c0_41 = arith.constant 0 : index
    %c0_42 = arith.constant 0 : index
    %89 = vector.load %arg14[%c0_40, %c0_41, %c0_42] : memref<1x16x8xf32, #tpu.memory_space<vmem>>, vector<1x16x8xf32>
    %90 = vector.shape_cast %89 : vector<1x16x8xf32> to vector<16x8xf32>
    %91 = vector.shape_cast %88 : vector<16x8xf32> to vector<1x16x8xf32>
    tpu.vector_store %arg14[%c0_40, %c0_41, %c0_42], %91 {strides = array<i32>} : memref<1x16x8xf32, #tpu.memory_space<vmem>>, vector<1x16x8xf32>,
    return
  }
  func.func @transform_0(%arg0: i32) -> (i32, i32, i32) {
    %c0_i32 = arith.constant 0 : i32
    %c0_i32_0 = arith.constant 0 : i32
    %c0_i32_1 = arith.constant 0 : i32
    return %arg0, %c0_i32, %c0_i32_0 : i32, i32, i32
  }
  func.func @transform_1(%arg0: i32) -> (i32, i32) {
    %c0_i32 = arith.constant 0 : i32
    %c0_i32_0 = arith.constant 0 : i32
    %c0_i32_1 = arith.constant 0 : i32
    return %c0_i32, %c0_i32_0 : i32, i32
  }
  func.func @transform_2(%arg0: i32) -> (i32, i32) {
    %c0_i32 = arith.constant 0 : i32
    %c0_i32_0 = arith.constant 0 : i32
    %c0_i32_1 = arith.constant 0 : i32
    return %c0_i32, %c0_i32_0 : i32, i32
  }
  func.func @transform_3(%arg0: i32) -> (i32, i32) {
    %c0_i32 = arith.constant 0 : i32
    %c0_i32_0 = arith.constant 0 : i32
    %c0_i32_1 = arith.constant 0 : i32
    return %c0_i32, %c0_i32_0 : i32, i32
  }
  func.func @transform_4(%arg0: i32) -> (i32, i32) {
    %c0_i32 = arith.constant 0 : i32
    %c0_i32_0 = arith.constant 0 : i32
    %c0_i32_1 = arith.constant 0 : i32
    return %c0_i32, %c0_i32_0 : i32, i32
  }
  func.func @transform_5(%arg0: i32) -> (i32, i32) {
    %c0_i32 = arith.constant 0 : i32
    %c0_i32_0 = arith.constant 0 : i32
    %c0_i32_1 = arith.constant 0 : i32
    return %c0_i32, %c0_i32_0 : i32, i32
  }
  func.func @transform_6(%arg0: i32) -> (i32, i32) {
    %c0_i32 = arith.constant 0 : i32
    %c0_i32_0 = arith.constant 0 : i32
    %c0_i32_1 = arith.constant 0 : i32
    return %c0_i32, %c0_i32_0 : i32, i32
  }
  func.func @transform_7(%arg0: i32) -> (i32, i32) {
    %c0_i32 = arith.constant 0 : i32
    %c0_i32_0 = arith.constant 0 : i32
    %c0_i32_1 = arith.constant 0 : i32
    return %c0_i32, %c0_i32_0 : i32, i32
  }
  func.func @transform_8(%arg0: i32) -> (i32, i32) {
    %c0_i32 = arith.constant 0 : i32
    %c0_i32_0 = arith.constant 0 : i32
    %c0_i32_1 = arith.constant 0 : i32
    return %c0_i32, %c0_i32_0 : i32, i32
  }
  func.func @transform_9(%arg0: i32) -> (i32, i32) {
    %c0_i32 = arith.constant 0 : i32
    %c0_i32_0 = arith.constant 0 : i32
    %c0_i32_1 = arith.constant 0 : i32
    return %c0_i32, %c0_i32_0 : i32, i32
  }
  func.func @transform_10(%arg0: i32) -> (i32, i32) {
    %c0_i32 = arith.constant 0 : i32
    %c0_i32_0 = arith.constant 0 : i32
    %c0_i32_1 = arith.constant 0 : i32
    return %c0_i32, %c0_i32_0 : i32, i32
  }
  func.func @transform_11(%arg0: i32) -> (i32, i32) {
    %c0_i32 = arith.constant 0 : i32
    %c0_i32_0 = arith.constant 0 : i32
    %c0_i32_1 = arith.constant 0 : i32
    return %c0_i32, %c0_i32_0 : i32, i32
  }
  func.func @transform_12(%arg0: i32) -> (i32, i32) {
    %c0_i32 = arith.constant 0 : i32
    %c0_i32_0 = arith.constant 0 : i32
    %c0_i32_1 = arith.constant 0 : i32
    return %c0_i32, %c0_i32_0 : i32, i32
  }
  func.func @transform_13(%arg0: i32) -> (i32, i32, i32) {
    %c0_i32 = arith.constant 0 : i32
    %c0_i32_0 = arith.constant 0 : i32
    %c0_i32_1 = arith.constant 0 : i32
    return %arg0, %c0_i32, %c0_i32_0 : i32, i32, i32
  }
}

</mosaic_0001>

<bundles_post_ra>
// kernel: tpu_custom_call.1
= control target key start
LH: loop header
LB: loop body
LE: loop exit
PB: predicated region body
PF: predicated region fallthrough
CT: control target
= control target key end

     0   :  { %s2232_s25 = smov 0   ;;  %s2762_s0 = inlined_call_operand.vmem [shape: f32[2,16,8], index: 0, kind: input, shape index: {}]   ;;  %s2763_s1 = inlined_call_operand.vmem [shape: f32[64,8], index: 1, kind: input, shape index: {}]   ;;  %s2764_s2 = inlined_call_operand.vmem [shape: f32[8,80], index: 2, kind: input, shape index: {}]   ;;  %s2765_s3 = inlined_call_operand.vmem [shape: f32[1,80], index: 3, kind: input, shape index: {}]   ;;  %s2766_s4 = inlined_call_operand.vmem [shape: f32[64,4], index: 4, kind: input, shape index: {}]   ;;  %s2767_s5 = inlined_call_operand.vmem [shape: f32[4,64], index: 5, kind: input, shape index: {}]   ;;  %s2768_s6 = inlined_call_operand.vmem [shape: bf16[16,16], index: 6, kind: input, shape index: {}]   ;;  %s2769_s7 = inlined_call_operand.vmem [shape: f32[1,16], index: 7, kind: input, shape index: {}]   ;;  %s2770_s8 = inlined_call_operand.vmem [shape: bf16[16,16], index: 8, kind: input, shape index: {}]   ;;  %s2771_s9 = inlined_call_operand.vmem [shape: f32[1,16], index: 9, kind: input, shape index: {}]   ;;  %s2772_s10 = inlined_call_operand.vmem [shape: f32[16,8], index: 10, kind: input, shape index: {}]   ;;  %s2773_s11 = inlined_call_operand.vmem [shape: f32[1,8], index: 11, kind: input, shape index: {}]   ;;  %s2774_s12 = inlined_call_operand.vmem [shape: f32[64,8], index: 12, kind: input, shape index: {}]   ;;  %s2775_s13 = inlined_call_operand.vmem [shape: f32[2,16,8], index: 13, kind: output, shape index: {}]  }
   0x1 LB: > { %s1879_s26 = sadd.s32 4294967295, %s2152_s25   ;;  %p1883_p0 = scmp.ge.s32.totalorder %s2152_s25, 1  ;;  %s2152_s25 = sphi %s2232_s25, %s23_s25  }
   0x2   : > { %p387_p1 = scmp.lt.s32.totalorder %s2152_s25, 3 }
   0x4   : > { %p388_p2 = pnand %p1883_p0, %p387_p1 }
   0x5   : > { %p431_p3 = scmp.lt.s32.totalorder (!%p388_p2), %s1879_s26, 1  ;;  %s2154_s20 = smov (!%p388_p2), 80  }
   0x6   : > { %391 = sbr.rel (%p388_p2) target bundleno = 2396 (0x95c), region = 72  ;;  %s2156_s22 = smov (!%p388_p2), 96  }
   0x7   : > { %s2157_s23 = smov (!%p388_p2), 16   ;;  %s2161_s16 = smov (!%p388_p2), 64  }
   0xb   : > { %v460_v0 = vld [vmem:[%s2764_s2] sm:$0xff]  ;;  %s2777_s26 = smov (!%p431_p3, %s1879_s26), 1  ;;  %v445_v2 = vld [vmem:[%s2763_s1 + $0x8] sm:$0xff]  ;;  %v446_v3 = vld [vmem:[%s2763_s1 + $0x10] sm:$0xff]  ;;  %vm468_vm0 = vcmask 64512   ;;  %vm678_vm1 = vcmask 130048  }
   0xc   : > { %1979 = vmatprep.subr.mxu0 %v460_v0  ;;  %v444_v1 = vld [vmem:[%s2763_s1] sm:$0xff]  ;;  %s1930_s14 = sshll.u32 %s2777_s26, 4  ;;  %v447_v9 = vld [vmem:[%s2763_s1 + $0x18] sm:$0xff]  ;;  %v449_v13 = vld [vmem:[%s2763_s1 + $0x28] sm:$0xff]  ;;  %vm2159_vm2 = vmmov 0   ;;  %vm1072_vm3 = vcmask 523264  }
   0xd   : > { %1980 = vmatpush3.msra.mxu0 %v460_v0  ;;  %s435_s21 = scalar_lea.vmem %s2762_s0, %s1930_s14  ;;  %v448_v10 = vld [vmem:[%s2763_s1 + $0x20] sm:$0xff]  ;;  %v450_v14 = vld [vmem:[%s2763_s1 + $0x30] sm:$0xff]  ;;  %v451_v17 = vld [vmem:[%s2763_s1 + $0x38] sm:$0xff]  ;;  %vm1154_vm4 = vcmask 31744   ;;  %vm1179_vm5 = vcmask 1043456   ;;  %s440_s19 = scalar_lea.vmem %s2775_s13, %s1930_s14 }
   0xe   : > { %v442_v4 = vld [vmem:[%s435_s21] sm:$0xff]  ;;  %v443_v5 = vld [vmem:[%s435_s21 + $0x8] sm:$0xff]  ;;  %s2155_s21 = smov 112  }
   0xf   : > { %v452_v6 = vmul.f32 %v444_v1, %v442_v4  ;;  %v453_v7 = vmul.f32 %v445_v2, %v443_v5  ;;  %v454_v8 = vmul.f32 %v446_v3, %v442_v4  ;;  %v455_v11 = vmul.f32 %v447_v9, %v443_v5  ;;  %v1888_v19 = vld [vmem:[%s2765_s3] ss:$0 sm:$0xff] }
  0x10   : > { %v456_v12 = vmul.f32 %v448_v10, %v442_v4  ;;  %v457_v15 = vmul.f32 %v449_v13, %v443_v5  ;;  %v458_v16 = vmul.f32 %v450_v14, %v442_v4  ;;  %v459_v18 = vmul.f32 %v451_v17, %v443_v5 }
  0x11   : > { %1981 = vmatprep.mubr.msk.f32.mxu0 %vm468_vm0, %v452_v6 }
  0x12   : > { %1982 = vmatmul.mubr.msk.f32.vlgmr.msra.gmra.mxu0 %vm468_vm0, %v453_v7 }
  0x13   : > { %1984 = vmatprep.mubr.msk.f32.mxu0 %vm468_vm0, %v454_v8 }
  0x16   : > { %1985 = vmatmul.mubr.msk.f32.gmra.mxu0 %vm468_vm0, %v455_v11 }
  0x17   : > { %1987 = vmatprep.mubr.msk.f32.mxu0 %vm468_vm0, %v456_v12 }
  0x1a   : > { %1988 = vmatmul.mubr.msk.f32.gmra.mxu0 %vm468_vm0, %v457_v15 }
  0x1b   : > { %1990 = vmatprep.mubr.msk.f32.mxu0 %vm468_vm0, %v458_v16 }
  0x1e   : > { %1991 = vmatmul.mubr.msk.f32.gmra.mxu0 %vm468_vm0, %v459_v18 }
  0xd2   : > { %v1983_v20 = vpop.f32.mrf.mxu0 }
  0xd3   : > { %v2286_v21 = vadd.f32 %v1983_v20, %v1888_v19 }
  0xd4   : > { %v559_v22 = vpop.f32.mrf.mxu0 }
  0xd5   : > { %737 = vrot.lane.b32.xlu0 %v2286_v21, %s2154_s20  ;;  %v2306_v31 = vadd.f32 %v1888_v19, %v559_v22  ;;  %v2314_v33 = vmul.f32 %v2286_v21, %v2286_v21 }
  0xd6   : > { %v1986_v23 = vpop.f32.mrf.mxu0 }
  0xd7   : > { %v2290_v24 = vadd.f32 %v1986_v23, %v1888_v19  ;;  %v2322_v34 = vmul.f32 %v2306_v31, %v2306_v31 }
  0xd8   : > { %v569_v25 = vpop.f32.mrf.mxu0 }
  0xd9   : > { %v2292_v26 = vadd.f32 %v1888_v19, %v569_v25  ;;  %741 = vrot.lane.b32.xlu0 %v2290_v24, %s2154_s20  ;;  %v2302_v29 = vmul.f32 %v2290_v24, %v2290_v24 }
  0xda   : > { %v1989_v27 = vpop.f32.mrf.mxu0 }
  0xdb   : > { %739 = vrot.lane.b32.xlu1 %v2292_v26, %s2154_s20  ;;  %v2298_v28 = vadd.f32 %v1989_v27, %v1888_v19  ;;  %v2332_v35 = vmul.f32 %v2292_v26, %v2292_v26 }
  0xdc   : > { %v579_v30 = vpop.f32.mrf.mxu0 }
  0xdd   : > { %885 = vrot.lane.b32.xlu0 %v2302_v29, %s2155_s21  ;;  %v2310_v32 = vadd.f32 %v1888_v19, %v579_v30  ;;  %v868_v36 = vmul.f32 %v2298_v28, %v2298_v28 }
  0xde   : > { %v1992_v37 = vpop.f32.mrf.mxu0 }
  0xdf   : > { %745 = vrot.lane.b32.xlu1 %v2298_v28, %s2154_s20  ;;  %v2353_v38 = vadd.f32 %v1992_v37, %v1888_v19  ;;  %v2363_v39 = vmul.f32 %v2310_v32, %v2310_v32 }
  0xe0   : > { %v589_v40 = vpop.f32.mrf.mxu0 }
  0xe1   : > { %881 = vrot.lane.b32.xlu0 %v2314_v33, %s2155_s21  ;;  %v2369_v41 = vadd.f32 %v1888_v19, %v589_v40  ;;  %v870_v42 = vmul.f32 %v2353_v38, %v2353_v38 }
  0xe3   : > { %743 = vrot.lane.b32.xlu1 %v2310_v32, %s2154_s20  ;;  %v2382_v43 = vmul.f32 %v2369_v41, %v2369_v41 }
  0xe5   : > { %879 = vrot.lane.b32.xlu0 %v2322_v34, %s2155_s21 }
  0xe7   : > { %735 = vrot.lane.b32.xlu1 %v2306_v31, %s2154_s20 }
  0xe9   : > { %713 = vrot.lane.b32.xlu0 %v2298_v28, %s2155_s21 }
  0xeb   : > { %883 = vrot.lane.b32.xlu1 %v2332_v35, %s2155_s21 }
  0xed   : > { %709 = vrot.lane.b32.xlu0 %v2290_v24, %s2155_s21 }
  0xef   : > { %616 = vrot.lane.b32.xlu1 %v2298_v28, %s2156_s22 }
  0xf1   : > { %610 = vrot.lane.b32.xlu0 %v2292_v26, %s2156_s22 }
  0xf3   : > { %612 = vrot.lane.b32.xlu1 %v2290_v24, %s2156_s22 }
  0xf5   : > { %705 = vrot.lane.b32.xlu0 %v2286_v21, %s2155_s21 }
  0xf7   : > { %707 = vrot.lane.b32.xlu1 %v2292_v26, %s2155_s21 }
  0xf9   : > { %889 = vrot.lane.b32.xlu0 %v868_v36, %s2155_s21 }
  0xfb   : > { %608 = vrot.lane.b32.xlu1 %v2286_v21, %s2156_s22 }
  0xfd   : > { %614 = vrot.lane.b32.xlu0 %v2310_v32, %s2156_s22 }
  0xff   : > { %711 = vrot.lane.b32.xlu1 %v2310_v32, %s2155_s21 }
 0x101   : > { %749 = vrot.lane.b32.xlu0 %v2353_v38, %s2154_s20 }
 0x103   : > { %887 = vrot.lane.b32.xlu1 %v2363_v39, %s2155_s21 }
 0x105   : > { %620 = vrot.lane.b32.xlu0 %v2353_v38, %s2156_s22 }
 0x107   : > { %717 = vrot.lane.b32.xlu1 %v2353_v38, %s2155_s21 }
 0x109   : > { %747 = vrot.lane.b32.xlu0 %v2369_v41, %s2154_s20 }
 0x10b   : > { %618 = vrot.lane.b32.xlu1 %v2369_v41, %s2156_s22 }
 0x10d   : > { %893 = vrot.lane.b32.xlu0 %v870_v42, %s2155_s21 }
 0x10f   : > { %891 = vrot.lane.b32.xlu1 %v2382_v43, %s2155_s21 }
 0x111   : > { %715 = vrot.lane.b32.xlu0 %v2369_v41, %s2155_s21 }
 0x147   : > { %v738_v44 = vpop.permute.xlu0 %737 }
 0x148   : > { %v760_v56 = vmul.f32 %v738_v44, %v2286_v21 }
 0x14b   : > { %v742_v45 = vpop.permute.xlu0 %741 }
 0x14c   : > { %v762_v46 = vmul.f32 %v742_v45, %v2290_v24 }
 0x14d   : > { %v740_v47 = vpop.permute.xlu1 %739 }
 0x14e   : > { %781 = vrot.lane.b32.xlu0 %v762_v46, %s2157_s23  ;;  %v761_v17 = vmul.f32 %v740_v47, %v2292_v26 }
 0x14f   : > { %v886_v48 = vpop.permute.xlu0 %885 }
 0x150   : > { %v2411_v5 = vadd.f32 %v886_v48, %v2302_v29 }
 0x151   : > { %v746_v49 = vpop.permute.xlu1 %745 }
 0x152   : > { %v764_v50 = vmul.f32 %v746_v49, %v2298_v28 }
 0x153   : > { %v882_v51 = vpop.permute.xlu0 %881 }
 0x154   : > { %785 = vrot.lane.b32.xlu0 %v764_v50, %s2157_s23  ;;  %v2456_v27 = vadd.f32 %v882_v51, %v2314_v33 }
 0x155   : > { %v744_v52 = vpop.permute.xlu1 %743 }
 0x156   : > { %v763_v53 = vmul.f32 %v744_v52, %v2310_v32 }
 0x157   : > { %v880_v54 = vpop.permute.xlu0 %879 }
 0x158   : > { %783 = vrot.lane.b32.xlu1 %v763_v53, %s2157_s23  ;;  %606 = vrot.lane.b32.xlu0 %v2306_v31, %s2156_s22  ;;  %v2427_v14 = vadd.f32 %v880_v54, %v2322_v34 }
 0x159   : > { %v736_v55 = vpop.permute.xlu1 %735 }
 0x15a   : > { %v759_v22 = vmul.f32 %v736_v55, %v2306_v31 }
 0x15b   : > { %v2397_v57 = vpop.permute.xlu0 %713 }
 0x15c   : > { %777 = vrot.lane.b32.xlu0 %v760_v56, %s2157_s23 }
 0x15d   : > { %v884_v58 = vpop.permute.xlu1 %883 }
 0x15e   : > { %v2451_v25 = vadd.f32 %v884_v58, %v2332_v35 }
 0x15f   : > { %v2400_v59 = vpop.permute.xlu0 %709 }
 0x160   : > { %v730_v50 = vmul.f32 %v2400_v59, %v2290_v24 }
 0x161   : > { %v617_v60 = vpop.permute.xlu1 %616 }
 0x162   : > { %v2461_v29 = vmul.f32 %v617_v60, %v2298_v28 }
 0x163   : > { %v611_v61 = vpop.permute.xlu0 %610 }
 0x164   : > { %v2476_v35 = vmul.f32 %v611_v61, %v2292_v26 }
 0x165   : > { %v613_v62 = vpop.permute.xlu1 %612 }
 0x166   : > { %v2471_v34 = vmul.f32 %v613_v62, %v2290_v24  ;;  %v732_v62 = vmul.f32 %v2397_v57, %v2298_v28 }
 0x167   : > { %v2402_v63 = vpop.permute.xlu0 %705 }
 0x168   : > { %v728_v47 = vmul.f32 %v2402_v63, %v2286_v21 }
 0x169   : > { %v2404_v0 = vpop.permute.xlu1 %707 }
 0x16a   : > { %v729_v58 = vmul.f32 %v2404_v0, %v2292_v26 }
 0x16b   : > { %v890_v1 = vpop.permute.xlu0 %889 }
 0x16c   : > { %v2406_v2 = vadd.f32 %v890_v1, %v868_v36 }
 0x16d   : > { %v609_v3 = vpop.permute.xlu1 %608 }
 0x16e   : > { %953 = vrot.lane.b32.xlu0 %v2406_v2, %s2156_s22 }
 0x16f   : > { %v615_v4 = vpop.permute.xlu0 %614 }
 0x170   : > { %v2466_v30 = vmul.f32 %v615_v4, %v2310_v32 }
 0x171   : > { %v2413_v6 = vpop.permute.xlu1 %711 }
 0x172   : > { %949 = vrot.lane.b32.xlu0 %v2411_v5, %s2156_s22  ;;  %v731_v1 = vmul.f32 %v2413_v6, %v2310_v32 }
 0x173   : > { %v750_v7 = vpop.permute.xlu0 %749 }
 0x174   : > { %v766_v8 = vmul.f32 %v750_v7, %v2353_v38 }
 0x175   : > { %v888_v9 = vpop.permute.xlu1 %887 }
 0x176   : > { %789 = vrot.lane.b32.xlu1 %v766_v8, %s2157_s23  ;;  %v2446_v23 = vadd.f32 %v888_v9, %v2363_v39  ;;  %v2483_v39 = vmul.f32 %v609_v3, %v2286_v21 }
 0x177   : > { %v621_v10 = vpop.permute.xlu0 %620 }
 0x178   : > { %v2420_v11 = vmul.f32 %v621_v10, %v2353_v38 }
 0x179   : > { %v2424_v12 = vpop.permute.xlu1 %717 }
 0x17a   : > { %660 = vrot.lane.b32.xlu0 %v2420_v11, %s2155_s21  ;;  %v734_v0 = vmul.f32 %v2424_v12, %v2353_v38 }
 0x17b   : > { %v748_v13 = vpop.permute.xlu0 %747 }
 0x17c   : > { %v765_v15 = vmul.f32 %v748_v13, %v2369_v41 }
 0x17d   : > { %v619_v19 = vpop.permute.xlu1 %618 }
 0x17e   : > { %943 = vrot.lane.b32.xlu0 %v2427_v14, %s2156_s22  ;;  %787 = vrot.lane.b32.xlu1 %v765_v15, %s2157_s23  ;;  %v2437_v20 = vmul.f32 %v619_v19, %v2369_v41 }
 0x17f   : > { %v894_v16 = vpop.permute.xlu0 %893 }
 0x180   : > { %v910_v18 = vadd.f32 %v894_v16, %v870_v42 }
 0x181   : > { %v892_v33 = vpop.permute.xlu1 %891 }
 0x182   : > { %779 = vrot.lane.b32.xlu1 %v761_v17, %s2157_s23  ;;  %957 = vrot.lane.b32.xlu0 %v910_v18, %s2156_s22  ;;  %v909_v36 = vadd.f32 %v892_v33, %v2382_v43  ;;  %v932_v37 = vsel %vm678_vm1, %v910_v18, 0.0  ;;  %v926_v17 = vsel %vm678_vm1, %v2406_v2, 0.0  ;;  %v923_v18 = vsel %vm678_vm1, %v2446_v23, 0.0 }
 0x183   : > { %v716_v42 = vpop.permute.xlu0 %715  ;;  %v917_v2 = vsel %vm678_vm1, %v2451_v25, 0.0 }
 0x184   : > { %v929_v40 = vsel %vm678_vm1, %v909_v36, 0.0  ;;  %v733_v54 = vmul.f32 %v716_v42, %v2369_v41 }
 0x186   : > { %703 = vrot.lane.b32.xlu1 %v2306_v31, %s2155_s21  ;;  %658 = vrot.lane.b32.xlu0 %v2437_v20, %s2155_s21 }
 0x18a   : > { %775 = vrot.lane.b32.xlu1 %v759_v22, %s2157_s23 }
 0x18e   : > { %951 = vrot.lane.b32.xlu1 %v2446_v23, %s2156_s22  ;;  %v914_v23 = vsel %vm678_vm1, %v2456_v27, 0.0 }
 0x192   : > { %947 = vrot.lane.b32.xlu1 %v2451_v25, %s2156_s22 }
 0x196   : > { %945 = vrot.lane.b32.xlu1 %v2456_v27, %s2156_s22 }
 0x19a   : > { %656 = vrot.lane.b32.xlu1 %v2461_v29, %s2155_s21 }
 0x19e   : > { %654 = vrot.lane.b32.xlu1 %v2466_v30, %s2155_s21 }
 0x1a2   : > { %652 = vrot.lane.b32.xlu1 %v2471_v34, %s2155_s21 }
 0x1a5   : > { %933 = vadd.xlane.f32.xlu0 %v932_v37 }
 0x1a6   : > { %650 = vrot.lane.b32.xlu1 %v2476_v35, %s2155_s21 }
 0x1a9   : > { %930 = vadd.xlane.f32.xlu0 %v929_v40 }
 0x1aa   : > { %648 = vrot.lane.b32.xlu1 %v2483_v39, %s2155_s21 }
 0x1ae   : > { %955 = vrot.lane.b32.xlu1 %v909_v36, %s2156_s22  ;;  %v920_v36 = vsel %vm678_vm1, %v2411_v5, 0.0 }
 0x1c0   : > { %v782_v44 = vpop.permute.xlu0 %781 }
 0x1c1   : > { %v802_v51 = vsub.f32 %v730_v50, %v782_v44 }
 0x1c6   : > { %v786_v43 = vpop.permute.xlu0 %785 }
 0x1c7   : > { %v804_v63 = vsub.f32 %v732_v62, %v786_v43 }
 0x1ca   : > { %v607_v45 = vpop.permute.xlu0 %606  ;;  %v784_v52 = vpop.permute.xlu1 %783 }
 0x1cb   : > { %v2490_v46 = vmul.f32 %v607_v45, %v2306_v31  ;;  %v803_v7 = vsub.f32 %v731_v1, %v784_v52  ;;  %v911_v45 = vsel %vm678_vm1, %v2427_v14, 0.0 }
 0x1cd   : > { %646 = vrot.lane.b32.xlu1 %v2490_v46, %s2155_s21 }
 0x1ce   : > { %v778_v48 = vpop.permute.xlu0 %777 }
 0x1cf   : > { %v800_v49 = vsub.f32 %v728_v47, %v778_v48 }
 0x1d1   : > { %817 = vrot.lane.b32.xlu0 %v800_v49, %s2155_s21 }
 0x1d5   : > { %821 = vrot.lane.b32.xlu0 %v802_v51, %s2155_s21 }
 0x1e0   : > { %v954_v9 = vpop.permute.xlu0 %953 }
 0x1e1   : > { %v982_v6 = vsel %vm678_vm1, %v954_v9, 0.0 }
 0x1e4   : > { %v950_v10 = vpop.permute.xlu0 %949 }
 0x1e8   : > { %v790_v53 = vpop.permute.xlu1 %789 }
 0x1e9   : > { %v806_v57 = vsub.f32 %v734_v0, %v790_v53 }
 0x1ec   : > { %v661_v13 = vpop.permute.xlu0 %660 }
 0x1ed   : > { %v677_v40 = vadd.f32 %v661_v13, %v2420_v11  ;;  %v2158_v13 = vmov 0.0  }
 0x1ee   : > { %1993 = vmatprep.subr.mxu1 %v2158_v13  ;;  %2009 = vmatprep.mubr.msk.f32.mxu1 %vm2159_vm2, %v2158_v13 }
 0x1ef   : > { %v700_v44 = vsel %vm678_vm1, %v677_v40, 0.0 }
 0x1f0   : > { %v788_v55 = vpop.permute.xlu1 %787  ;;  %v944_v16 = vpop.permute.xlu0 %943 }
 0x1f1   : > { %v805_v56 = vsub.f32 %v733_v54, %v788_v55  ;;  %v976_v55 = vsel %vm678_vm1, %v950_v10, 0.0 }
 0x1f4   : > { %v780_v60 = vpop.permute.xlu1 %779  ;;  %v958_v19 = vpop.permute.xlu0 %957 }
 0x1f5   : > { %v801_v61 = vsub.f32 %v729_v58, %v780_v60  ;;  %v988_v22 = vsel %vm678_vm1, %v958_v19, 0.0 }
 0x1f7   : > { %819 = vrot.lane.b32.xlu0 %v801_v61, %s2155_s21 }
 0x1f8   : > { %v704_v59 = vpop.permute.xlu1 %703  ;;  %v659_v49 = vpop.permute.xlu0 %658 }
 0x1f9   : > { %v727_v3 = vmul.f32 %v704_v59, %v2306_v31  ;;  %v676_v51 = vadd.f32 %v659_v49, %v2437_v20 }
 0x1fb   : > { %825 = vrot.lane.b32.xlu0 %v804_v63, %s2155_s21  ;;  %v697_v52 = vsel %vm678_vm1, %v676_v51, 0.0  ;;  %v967_v63 = vsel %vm678_vm1, %v944_v16, 0.0 }
 0x1fc   : > { %v776_v4 = vpop.permute.xlu1 %775 }
 0x1fd   : > { %v799_v8 = vsub.f32 %v727_v3, %v776_v4 }
 0x1ff   : > { %815 = vrot.lane.b32.xlu1 %v799_v8, %s2155_s21  ;;  %823 = vrot.lane.b32.xlu0 %v803_v7, %s2155_s21 }
 0x200   : > { %v952_v15 = vpop.permute.xlu1 %951 }
 0x203   : > { %829 = vrot.lane.b32.xlu1 %v806_v57, %s2155_s21 }
 0x204   : > { %v948_v12 = vpop.permute.xlu1 %947 }
 0x205   : > { %v973_v58 = vsel %vm678_vm1, %v948_v12, 0.0 }
 0x208   : > { %v946_v33 = vpop.permute.xlu1 %945 }
 0x209   : > { %v970_v62 = vsel %vm678_vm1, %v946_v33, 0.0 }
 0x20c   : > { %v657_v37 = vpop.permute.xlu1 %656 }
 0x20d   : > { %v675_v5 = vadd.f32 %v657_v37, %v2461_v29 }
 0x20f   : > { %v694_v47 = vsel %vm678_vm1, %v675_v5, 0.0 }
 0x210   : > { %v655_v42 = vpop.permute.xlu1 %654 }
 0x211   : > { %v674_v25 = vadd.f32 %v655_v42, %v2466_v30  ;;  %v979_v30 = vsel %vm678_vm1, %v952_v15, 0.0 }
 0x213   : > { %v691_v48 = vsel %vm678_vm1, %v674_v25, 0.0 }
 0x214   : > { %v653_v43 = vpop.permute.xlu1 %652 }
 0x215   : > { %v673_v27 = vadd.f32 %v653_v43, %v2471_v34 }
 0x217   : > { %v688_v29 = vsel %vm678_vm1, %v673_v27, 0.0 }
 0x218   : > { %v651_v11 = vpop.permute.xlu1 %650 }
 0x219   : > { %v672_v14 = vadd.f32 %v651_v11, %v2476_v35 }
 0x21b   : > { %v685_v20 = vsel %vm678_vm1, %v672_v14, 0.0 }
 0x21c   : > { %v649_v50 = vpop.permute.xlu1 %648 }
 0x21d   : > { %v671_v54 = vadd.f32 %v649_v50, %v2483_v39 }
 0x21e   : > { %983 = vadd.xlane.f32.xlu0 %v982_v6 }
 0x21f   : > { %v682_v60 = vsel %vm678_vm1, %v671_v54, 0.0 }
 0x220   : > { %v956_v53 = vpop.permute.xlu1 %955 }
 0x227   : > { %927 = vadd.xlane.f32.xlu1 %v926_v17 }
 0x22b   : > { %924 = vadd.xlane.f32.xlu1 %v923_v18 }
 0x22e   : > { %v2542_v34 = vpop.xlane.xlu0 %933 }
 0x22f   : > { %989 = vadd.xlane.f32.xlu1 %v988_v22 }
 0x232   : > { %v2550_v61 = vpop.xlane.xlu0 %930 }
 0x233   : > { %921 = vadd.xlane.f32.xlu1 %v920_v36 }
 0x234   : > { %827 = vrot.lane.b32.xlu0 %v805_v56, %s2155_s21 }
 0x237   : > { %918 = vadd.xlane.f32.xlu1 %v917_v2 }
 0x23b   : > { %915 = vadd.xlane.f32.xlu1 %v914_v23 }
 0x23f   : > { %701 = vadd.xlane.f32.xlu1 %v700_v44  ;;  %v647_v56 = vpop.permute.xlu1 %646 }
 0x240   : > { %v670_v35 = vadd.f32 %v647_v56, %v2490_v46  ;;  %v985_v46 = vsel %vm678_vm1, %v956_v53, 0.0 }
 0x242   : > { %v679_v39 = vsel %vm678_vm1, %v670_v35, 0.0 }
 0x243   : > { %912 = vadd.xlane.f32.xlu1 %v911_v45  ;;  %v818_v59 = vpop.permute.xlu0 %817 }
 0x244   : > { %v842_v22 = vsel %vm678_vm1, %v818_v59, 0.0 }
 0x247   : > { %695 = vadd.xlane.f32.xlu1 %v694_v47  ;;  %v822_v1 = vpop.permute.xlu0 %821 }
 0x248   : > { %v848_v4 = vsel %vm678_vm1, %v822_v1, 0.0 }
 0x24b   : > { %692 = vadd.xlane.f32.xlu1 %v691_v48 }
 0x24f   : > { %689 = vadd.xlane.f32.xlu1 %v688_v29 }
 0x253   : > { %980 = vadd.xlane.f32.xlu0 %v979_v30  ;;  %698 = vadd.xlane.f32.xlu1 %v697_v52 }
 0x257   : > { %977 = vadd.xlane.f32.xlu0 %v976_v55  ;;  %686 = vadd.xlane.f32.xlu1 %v685_v20 }
 0x25b   : > { %974 = vadd.xlane.f32.xlu0 %v973_v58  ;;  %683 = vadd.xlane.f32.xlu1 %v682_v60 }
 0x25f   : > { %971 = vadd.xlane.f32.xlu0 %v970_v62  ;;  %680 = vadd.xlane.f32.xlu1 %v679_v39 }
 0x263   : > { %968 = vadd.xlane.f32.xlu0 %v967_v63 }
 0x267   : > { %986 = vadd.xlane.f32.xlu0 %v985_v46 }
 0x269   : > { %v820_v3 = vpop.permute.xlu0 %819 }
 0x26a   : > { %v845_v18 = vsel %vm678_vm1, %v820_v3, 0.0 }
 0x26b   : > { %849 = vadd.xlane.f32.xlu0 %v848_v4 }
 0x26d   : > { %v826_v7 = vpop.permute.xlu0 %825 }
 0x26e   : > { %v854_v8 = vsel %vm678_vm1, %v826_v7, 0.0 }
 0x26f   : > { %855 = vadd.xlane.f32.xlu0 %v854_v8 }
 0x271   : > { %v816_v0 = vpop.permute.xlu1 %815  ;;  %v824_v57 = vpop.permute.xlu0 %823 }
 0x272   : > { %v851_v9 = vsel %vm678_vm1, %v824_v57, 0.0  ;;  %v839_v33 = vsel %vm678_vm1, %v816_v0, 0.0 }
 0x273   : > { %852 = vadd.xlane.f32.xlu0 %v851_v9 }
 0x275   : > { %v830_v10 = vpop.permute.xlu1 %829 }
 0x276   : > { %v860_v6 = vsel %vm678_vm1, %v830_v10, 0.0 }
 0x277   : > { %861 = vadd.xlane.f32.xlu0 %v860_v6 }
 0x2a7   : > { %v984_v15 = vpop.xlane.xlu0 %983 }
 0x2ab   : > { %v828_v16 = vpop.permute.xlu0 %827 }
 0x2ac   : > { %v857_v17 = vsel %vm678_vm1, %v828_v16, 0.0 }
 0x2ad   : > { %858 = vadd.xlane.f32.xlu0 %v857_v17 }
 0x2b0   : > { %v928_v12 = vpop.xlane.xlu1 %927 }
 0x2b1   : > { %v1020_v19 = vmul.f32 %v984_v15, %v928_v12  ;;  %846 = vadd.xlane.f32.xlu0 %v845_v18 }
 0x2b3   : > { %v1028_v49 = vmax.f32 %v1020_v19, 1e-06 }
 0x2b4   : > { %v925_v36 = vpop.xlane.xlu1 %924 }
 0x2b5   : > { %843 = vadd.xlane.f32.xlu0 %v842_v22 }
 0x2b8   : > { %v990_v37 = vpop.xlane.xlu1 %989 }
 0x2b9   : > { %840 = vadd.xlane.f32.xlu0 %v839_v33  ;;  %v1022_v29 = vmul.f32 %v990_v37, %v2542_v34 }
 0x2bb   : > { %v1030_v52 = vmax.f32 %v1022_v29, 1e-06 }
 0x2bc   : > { %v922_v2 = vpop.xlane.xlu1 %921 }
 0x2c0   : > { %v919_v40 = vpop.xlane.xlu1 %918 }
 0x2c4   : > { %v916_v23 = vpop.xlane.xlu1 %915 }
 0x2c8   : > { %v702_v42 = vpop.xlane.xlu1 %701 }
 0x2c9   : > { %v998_v3 = vmul.f32 %v702_v42, %v702_v42 }
 0x2cc   : > { %v913_v5 = vpop.xlane.xlu1 %912 }
 0x2d0   : > { %v696_v11 = vpop.xlane.xlu1 %695 }
 0x2d1   : > { %v996_v58 = vmul.f32 %v696_v11, %v696_v11 }
 0x2d4   : > { %v693_v50 = vpop.xlane.xlu1 %692 }
 0x2d8   : > { %v690_v30 = vpop.xlane.xlu1 %689 }
 0x2d9   : > { %v994_v54 = vmul.f32 %v690_v30, %v690_v30 }
 0x2dc   : > { %v981_v44 = vpop.xlane.xlu0 %980  ;;  %v699_v17 = vpop.xlane.xlu1 %698 }
 0x2dd   : > { %v1019_v43 = vmul.f32 %v981_v44, %v925_v36  ;;  %v995_v36 = vmul.f32 %v693_v50, %v693_v50 }
 0x2df   : > { %v1027_v6 = vmax.f32 %v1019_v43, 1e-06 }
 0x2e0   : > { %v978_v45 = vpop.xlane.xlu0 %977  ;;  %v687_v37 = vpop.xlane.xlu1 %686 }
 0x2e1   : > { %v1018_v25 = vmul.f32 %v978_v45, %v922_v2  ;;  %v997_v45 = vmul.f32 %v699_v17, %v699_v17 }
 0x2e3   : > { %v1026_v27 = vmax.f32 %v1018_v25, 1e-06 }
 0x2e4   : > { %v975_v47 = vpop.xlane.xlu0 %974 }
 0x2e5   : > { %2082 = vrcp.f32 %v1026_v27  ;;  %v1017_v15 = vmul.f32 %v975_v47, %v919_v40  ;;  %v684_v40 = vpop.xlane.xlu1 %683  ;;  %v993_v27 = vmul.f32 %v687_v37, %v687_v37 }
 0x2e6   : > { %2084 = vrcp.f32 %v1028_v49  ;;  %v992_v30 = vmul.f32 %v684_v40, %v684_v40  ;;  %v1153_v40 = vld [vmem:[%s2766_s4 + $0x38] sm:$0xff] }
 0x2e7   : > { %2086 = vrcp.f32 %v1030_v52  ;;  %v1025_v12 = vmax.f32 %v1017_v15, 1e-06 }
 0x2e8   : > { %v972_v48 = vpop.xlane.xlu0 %971 }
 0x2e9   : > { %v1016_v18 = vmul.f32 %v972_v48, %v916_v23 }
 0x2eb   : > { %v1024_v19 = vmax.f32 %v1016_v18, 1e-06 }
 0x2ec   : > { %v969_v51 = vpop.xlane.xlu0 %968 }
 0x2ed   : > { %v1015_v22 = vmul.f32 %v969_v51, %v913_v5 }
 0x2ef   : > { %v1023_v2 = vmax.f32 %v1015_v22, 1e-06  ;;  %v1071_v22 = vld [vmem:[%s2767_s5] sm:$0xf] }
 0x2f0   : > { %v987_v14 = vpop.xlane.xlu0 %986 }
 0x2f1   : > { %v1021_v10 = vmul.f32 %v987_v14, %v2550_v61 }
 0x2f2   : > { %v2083_v56 = vpop.eup %2082 }
 0x2f3   : > { %v2085_v59 = vpop.eup %2084  ;;  %v1029_v16 = vmax.f32 %v1021_v10, 1e-06 }
 0x2f4   : > { %v850_v53 = vpop.xlane.xlu0 %849  ;;  %v2087_v7 = vpop.eup %2086 }
 0x2f5   : > { %v1002_v55 = vmul.f32 %v850_v53, %v850_v53 }
 0x2f7   : > { %v1010_v20 = vadd.f32 %v1002_v55, %v994_v54  ;;  %v681_v54 = vpop.xlane.xlu1 %680 }
 0x2f8   : > { %v856_v35 = vpop.xlane.xlu0 %855 }
 0x2f9   : > { %v1042_v60 = vmul.f32 %v2083_v56, %v1010_v20  ;;  %v1004_v62 = vmul.f32 %v856_v35, %v856_v35 }
 0x2fb   : > { %v1012_v39 = vadd.f32 %v1004_v62, %v996_v58  ;;  %v1050_v52 = vmul.f32 2.0, %v1042_v60 }
 0x2fc   : > { %v853_v63 = vpop.xlane.xlu0 %852 }
 0x2fd   : > { %v1044_v1 = vmul.f32 %v2085_v59, %v1012_v39  ;;  %v1003_v33 = vmul.f32 %v853_v63, %v853_v63  ;;  %v991_v63 = vmul.f32 %v681_v54, %v681_v54 }
 0x2ff   : > { %v1011_v42 = vadd.f32 %v1003_v33, %v995_v36  ;;  %v1052_v48 = vmul.f32 2.0, %v1044_v1  ;;  %v1146_v36 = vld [vmem:[%s2766_s4] sm:$0xff] }
 0x300   : > { %v862_v46 = vpop.xlane.xlu0 %861  ;;  %2014 = vmatprep.mubr.msk.f32.mxu0 %vm1154_vm4, %v1146_v36 }
 0x301   : > { %v1006_v34 = vmul.f32 %v862_v46, %v862_v46  ;;  %v1065_v55 = vmul.f32 1.442695, %v1052_v48  ;;  %v1061_v46 = vmul.f32 1.442695, %v1050_v52 }
 0x303   : > { %v1014_v4 = vadd.f32 %v1006_v34, %v998_v3 }
 0x305   : > { %v1046_v8 = vmul.f32 %v2087_v7, %v1014_v4 }
 0x307   : > { %v1054_v0 = vmul.f32 2.0, %v1046_v8 }
 0x309   : > { %v1069_v57 = vmul.f32 1.442695, %v1054_v0 }
 0x30b   : > { %2088 = vpow2.f32 %v1069_v57 }
 0x30c   : > { %2090 = vrcp.f32 %v1027_v6 }
 0x30d   : > { %2092 = vrcp.f32 %v1029_v16 }
 0x30e   : > { %2094 = vrcp.f32 %v1025_v12 }
 0x30f   : > { %2096 = vrcp.f32 %v1024_v19 }
 0x310   : > { %2098 = vrcp.f32 %v1023_v2  ;;  %v1147_v2 = vld [vmem:[%s2766_s4 + $0x8] sm:$0xff] }
 0x318   : > { %v2567_v9 = vpop.eup %2088 }
 0x319   : > { %1994 = vmatpush3.msra.mxu1 %v2567_v9  ;;  %v2091_v43 = vpop.eup %2090 }
 0x31a   : > { %1995 = vmatprep.subr.mxu1 %v2158_v13  ;;  %v1043_v25 = vmul.f32 %v2091_v43, %v1011_v42  ;;  %v2093_v11 = vpop.eup %2092  ;;  %v1152_v43 = vld [vmem:[%s2766_s4 + $0x30] sm:$0xff] }
 0x31b   : > { %v2095_v14 = vpop.eup %2094 }
 0x31c   : > { %v1051_v51 = vmul.f32 2.0, %v1043_v25  ;;  %v2097_v59 = vpop.eup %2096  ;;  %v2160_v25 = vmov 0  }
 0x31d   : > { %v2099_v8 = vpop.eup %2098  ;;  %2078 = vset.pattern.permute.xlu0 %v2160_v25  ;;  %2079 = vset.pattern.permute.xlu1 %v2160_v25 }
 0x31e   : > { %v1063_v58 = vmul.f32 1.442695, %v1051_v51 }
 0x336   : > { %v859_v44 = vpop.xlane.xlu0 %858 }
 0x337   : > { %v1005_v61 = vmul.f32 %v859_v44, %v859_v44  ;;  %v1149_v44 = vld [vmem:[%s2766_s4 + $0x18] sm:$0xff] }
 0x339   : > { %v1013_v47 = vadd.f32 %v1005_v61, %v997_v45  ;;  %v1150_v45 = vld [vmem:[%s2766_s4 + $0x20] sm:$0xff]  ;;  %v1151_v61 = vld [vmem:[%s2766_s4 + $0x28] sm:$0xff] }
 0x33a   : > { %v847_v23 = vpop.xlane.xlu0 %846 }
 0x33b   : > { %v1045_v49 = vmul.f32 %v2093_v11, %v1013_v47  ;;  %v1001_v5 = vmul.f32 %v847_v23, %v847_v23 }
 0x33d   : > { %v1053_v50 = vmul.f32 2.0, %v1045_v49  ;;  %v1009_v29 = vadd.f32 %v1001_v5, %v993_v27 }
 0x33e   : > { %v844_v53 = vpop.xlane.xlu0 %843 }
 0x33f   : > { %v1067_v20 = vmul.f32 1.442695, %v1053_v50  ;;  %v1041_v56 = vmul.f32 %v2095_v14, %v1009_v29  ;;  %v1000_v35 = vmul.f32 %v844_v53, %v844_v53 }
 0x341   : > { %2100 = vpow2.f32 %v1067_v20  ;;  %v1049_v62 = vmul.f32 2.0, %v1041_v56  ;;  %v1008_v39 = vadd.f32 %v1000_v35, %v992_v30 }
 0x342   : > { %v841_v1 = vpop.xlane.xlu0 %840  ;;  %2102 = vpow2.f32 %v1065_v55 }
 0x343   : > { %v1040_v3 = vmul.f32 %v2097_v59, %v1008_v39  ;;  %v999_v34 = vmul.f32 %v841_v1, %v841_v1  ;;  %2104 = vpow2.f32 %v1063_v58  ;;  %v1059_v4 = vmul.f32 1.442695, %v1049_v62  ;;  %v2080_v1 = vld [vmem:[%s2768_s6] sm:$0xff]  }
 0x344   : > { %2106 = vpow2.f32 %v1061_v46 }
 0x345   : > { %v1048_v60 = vmul.f32 2.0, %v1040_v3  ;;  %v1007_v7 = vadd.f32 %v999_v34, %v991_v63  ;;  %2108 = vpow2.f32 %v1059_v4 }
 0x347   : > { %v1057_v0 = vmul.f32 1.442695, %v1048_v60  ;;  %v1039_v57 = vmul.f32 %v2099_v8, %v1007_v7 }
 0x349   : > { %v1047_v10 = vmul.f32 2.0, %v1039_v57  ;;  %2110 = vpow2.f32 %v1057_v0 }
 0x34b   : > { %v1055_v6 = vmul.f32 1.442695, %v1047_v10 }
 0x34d   : > { %2112 = vpow2.f32 %v1055_v6 }
 0x34e   : > { %v2572_v15 = vpop.eup %2100 }
 0x34f   : > { %1996 = vmatpush3.msra.mxu1 %v2572_v15  ;;  %v2575_v16 = vpop.eup %2102 }
 0x350   : > { %1997 = vmatprep.subr.mxu1 %v2158_v13  ;;  %v2579_v17 = vpop.eup %2104 }
 0x351   : > { %1998 = vmatpush3.msra.mxu1 %v2575_v16  ;;  %v2107_v12 = vpop.eup %2106 }
 0x352   : > { %1999 = vmatprep.subr.mxu1 %v2158_v13  ;;  %v2584_v18 = vpop.eup %2108 }
 0x353   : > { %2000 = vmatpush3.msra.mxu1 %v2579_v17 }
 0x354   : > { %2001 = vmatprep.subr.mxu1 %v2158_v13 }
 0x355   : > { %2002 = vmatpush3.msra.mxu1 %v2107_v12 }
 0x356   : > { %2003 = vmatprep.subr.mxu1 %v2158_v13  ;;  %v2111_v19 = vpop.eup %2110 }
 0x357   : > { %2004 = vmatpush3.msra.mxu1 %v2584_v18 }
 0x358   : > { %2005 = vmatprep.subr.mxu1 %v2158_v13 }
 0x359   : > { %2006 = vmatpush3.msra.mxu1 %v2111_v19 }
 0x35a   : > { %v2113_v33 = vpop.eup %2112  ;;  %2007 = vmatprep.subr.mxu1 %v2158_v13  ;;  %v1148_v13 = vld [vmem:[%s2766_s4 + $0x10] sm:$0xff] }
 0x35b   : > { %2008 = vmatpush3.msra.mxu1 %v2113_v33 }
 0x35c   : > { %2010 = vmatmul.mubr.msk.f32.vlgmr.msra.gmra.mxu1 %vm1072_vm3, %v1071_v22  ;;  %2026 = vmatprep.subr.bf16.mxu1 %v2080_v1 }
 0x35d   : > { %2027 = vmatpush3.bf16.msra.mxu1 %v2080_v1 }
 0x41c   : > { %v1142_v37 = vpop.f32.mrf.mxu1 }
 0x41d   : > { %2012 = vmatprep.subr.msk.mxu0 %vm1179_vm5, %v1142_v37 }
 0x41e   : > { %v2011_v42 = vpop.f32.mrf.mxu1  ;;  %2013 = vmatpush3.msk.msra.mxu0 %vm1179_vm5, %v1142_v37 }
 0x41f   : > { %2015 = vmatmul.mubr.msk.f32.vlgmr.msra.gmra.mxu0 %vm1154_vm4, %v1147_v2 }
 0x420   : > { %2017 = vmatprep.mubr.msk.f32.mxu0 %vm1154_vm4, %v1148_v13 }
 0x423   : > { %2018 = vmatmul.mubr.msk.f32.gmra.mxu0 %vm1154_vm4, %v1149_v44 }
 0x424   : > { %2020 = vmatprep.mubr.msk.f32.mxu0 %vm1154_vm4, %v1150_v45 }
 0x427   : > { %2021 = vmatmul.mubr.msk.f32.gmra.mxu0 %vm1154_vm4, %v1151_v61 }
 0x428   : > { %2023 = vmatprep.mubr.msk.f32.mxu0 %vm1154_vm4, %v1152_v43 }
 0x42b   : > { %2024 = vmatmul.mubr.msk.f32.gmra.mxu0 %vm1154_vm4, %v1153_v40 }
 0x4df   : > { %v2016_v47 = vpop.f32.mrf.mxu0 }
 0x4e0   : > { %2114 = vrcp.f32 %v2016_v47 }
 0x4e1   : > { %v1249_v11 = vpop.f32.mrf.mxu0 }
 0x4e2   : > { %2116 = vrcp.f32 %v1249_v11 }
 0x4e3   : > { %v2019_v23 = vpop.f32.mrf.mxu0 }
 0x4e4   : > { %2118 = vrcp.f32 %v2019_v23 }
 0x4e5   : > { %v1259_v27 = vpop.f32.mrf.mxu0 }
 0x4e6   : > { %2120 = vrcp.f32 %v1259_v27 }
 0x4e7   : > { %v2022_v48 = vpop.f32.mrf.mxu0 }
 0x4e8   : > { %2122 = vrcp.f32 %v2022_v48 }
 0x4e9   : > { %v1269_v49 = vpop.f32.mrf.mxu0 }
 0x4ea   : > { %2124 = vrcp.f32 %v1269_v49 }
 0x4eb   : > { %v2025_v51 = vpop.f32.mrf.mxu0 }
 0x4ed   : > { %v2115_v5 = vpop.eup %2114  ;;  %v1279_v52 = vpop.f32.mrf.mxu0 }
 0x4ee   : > { %v1297_v50 = vmul.f32 %v2115_v5, %v2111_v19  ;;  %2126 = vrcp.f32 %v1279_v52 }
 0x4ef   : > { %v2117_v29 = vpop.eup %2116  ;;  %2128 = vrcp.f32 %v2025_v51 }
 0x4f0   : > { %1311 = vperm.xlu0 %2078, %v1297_v50   ;;  %v1296_v14 = vmul.f32 %v2117_v29, %v2113_v33 }
 0x4f1   : > { %v2119_v30 = vpop.eup %2118 }
 0x4f2   : > { %1306 = vperm.xlu1 %2079, %v1296_v14   ;;  %v1299_v53 = vmul.f32 %v2119_v30, %v2107_v12 }
 0x4f3   : > { %v2121_v54 = vpop.eup %2120 }
 0x4f4   : > { %v1298_v55 = vmul.f32 %v2121_v54, %v2584_v18 }
 0x4f5   : > { %v2123_v20 = vpop.eup %2122 }
 0x4f6   : > { %1321 = vperm.xlu1 %2079, %v1299_v53   ;;  %v1301_v56 = vmul.f32 %v2123_v20, %v2575_v16 }
 0x4f7   : > { %v2125_v35 = vpop.eup %2124 }
 0x4f8   : > { %v1300_v58 = vmul.f32 %v2125_v35, %v2579_v17 }
 0x4fa   : > { %1316 = vperm.xlu1 %2079, %v1298_v55  }
 0x4fb   : > { %v2127_v62 = vpop.eup %2126 }
 0x4fc   : > { %v1302_v39 = vmul.f32 %v2127_v62, %v2572_v15  ;;  %v2129_v59 = vpop.eup %2128 }
 0x4fd   : > { %v1303_v63 = vmul.f32 %v2129_v59, %v2567_v9 }
 0x4fe   : > { %1331 = vperm.xlu1 %2079, %v1301_v56  }
 0x502   : > { %1326 = vperm.xlu1 %2079, %v1300_v58  }
 0x506   : > { %1336 = vperm.xlu1 %2079, %v1302_v39  }
 0x50a   : > { %1341 = vperm.xlu1 %2079, %v1303_v63  }
 0x56b   : > { %v1312_v46 = vpop.permute.xlu0 %1311 }
 0x56c   : > { %v2634_v34 = vmul.f32 %v1312_v46, %v2286_v21 }
 0x56d   : > { %v1307_v3 = vpop.permute.xlu1 %1306 }
 0x56e   : > { %v2637_v4 = vmul.f32 %v1307_v3, %v2306_v31 }
 0x570   : > { %v1352_v60 = vpack.c.bf16 %v2634_v34, %v2637_v4 }
 0x571   : > { %v1322_v7 = vpop.permute.xlu1 %1321 }
 0x572   : > { %1369 = vrot.lane.b32.xlu1 %v1352_v60, %s2161_s16  ;;  %v2643_v8 = vmul.f32 %v1322_v7, %v2290_v24 }
 0x575   : > { %v1317_v9 = vpop.permute.xlu1 %1316 }
 0x576   : > { %v2646_v0 = vmul.f32 %v1317_v9, %v2292_v26 }
 0x578   : > { %v1353_v21 = vpack.c.bf16 %v2643_v8, %v2646_v0 }
 0x579   : > { %v1332_v57 = vpop.permute.xlu1 %1331 }
 0x57a   : > { %1371 = vrot.lane.b32.xlu1 %v1353_v21, %s2161_s16  ;;  %v2652_v10 = vmul.f32 %v1332_v57, %v2298_v28 }
 0x57d   : > { %v1327_v31 = vpop.permute.xlu1 %1326 }
 0x57e   : > { %v2655_v6 = vmul.f32 %v1327_v31, %v2310_v32 }
 0x580   : > { %v1354_v24 = vpack.c.bf16 %v2652_v10, %v2655_v6 }
 0x581   : > { %v1337_v15 = vpop.permute.xlu1 %1336 }
 0x582   : > { %1373 = vrot.lane.b32.xlu0 %v1354_v24, %s2161_s16  ;;  %v2661_v16 = vmul.f32 %v1337_v15, %v2369_v41  ;;  %v1907_v41 = vld [vmem:[%s2769_s7] ss:$0 sm:$0xff] }
 0x585   : > { %v1342_v26 = vpop.permute.xlu1 %1341 }
 0x586   : > { %v2664_v17 = vmul.f32 %v1342_v26, %v2353_v38  ;;  %v2081_v38 = vld [vmem:[%s2770_s8] sm:$0xff]  }
 0x587   : > { %2036 = vmatprep.subr.bf16.mxu0 %v2081_v38 }
 0x588   : > { %v1355_v28 = vpack.c.bf16 %v2664_v17, %v2661_v16  ;;  %2037 = vmatpush3.bf16.msra.mxu0 %v2081_v38 }
 0x58a   : > { %1375 = vrot.lane.b32.xlu1 %v1355_v28, %s2161_s16 }
 0x5e4   : > { %v1370_v32 = vpop.permute.xlu1 %1369 }
 0x5e5   : > { %2028 = vmatprep.mubr.msk.bf16.mxu1 %vm678_vm1, %v1370_v32 }
 0x5ec   : > { %v1372_v12 = vpop.permute.xlu1 %1371 }
 0x5ed   : > { %2029 = vmatmul.mubr.msk.bf16.vlgmr.msra.gmra.mxu1 %vm678_vm1, %v1372_v12 }
 0x5f4   : > { %v1374_v18 = vpop.permute.xlu0 %1373 }
 0x5f5   : > { %2032 = vmatprep.mubr.msk.bf16.mxu1 %vm678_vm1, %v1374_v18 }
 0x5fc   : > { %v1376_v19 = vpop.permute.xlu1 %1375 }
 0x5fd   : > { %2033 = vmatmul.mubr.msk.bf16.gmra.mxu1 %vm678_vm1, %v1376_v19 }
 0x6ad   : > { %v2030_v22 = vpop.f32.mrf.mxu1 }
 0x6ae   : > { %v1438_v33 = vadd.f32 %v2030_v22, %v1907_v41 }
 0x6af   : > { %v1429_v36 = vpop.f32.mrf.mxu1 }
 0x6b0   : > { %v1430_v37 = vadd.f32 %v1907_v41, %v1429_v36  ;;  %v1470_v2 = vmul.f32 0.70710677, %v1438_v33  ;;  %v1462_v59 = vmul.f32 0.5, %v1438_v33 }
 0x6b1   : > { %v2031_v13 = vpop.f32.mrf.mxu1 }
 0x6b2   : > { %v1468_v42 = vmul.f32 0.70710677, %v1430_v37  ;;  %v1441_v44 = vadd.f32 %v2031_v13, %v1907_v41  ;;  %v1460_v35 = vmul.f32 0.5, %v1430_v37 }
 0x6b3   : > { %v1432_v45 = vpop.f32.mrf.mxu1 }
 0x6b4   : > { %2130 = verf.f32 %v1468_v42  ;;  %v1471_v61 = vmul.f32 0.70710677, %v1441_v44  ;;  %v1433_v43 = vadd.f32 %v1907_v41, %v1432_v45  ;;  %v1463_v20 = vmul.f32 0.5, %v1441_v44  ;;  %v1918_v44 = vld [vmem:[%s2771_s9] ss:$0 sm:$0xff] }
 0x6b5   : > { %2132 = verf.f32 %v1470_v2 }
 0x6b6   : > { %2134 = verf.f32 %v1471_v61  ;;  %v1469_v40 = vmul.f32 0.70710677, %v1433_v43  ;;  %v1461_v58 = vmul.f32 0.5, %v1433_v43 }
 0x6b8   : > { %2136 = verf.f32 %v1469_v40  ;;  %v1647_v40 = vld [vmem:[%s2772_s10 + $0x8] sm:$0xff] }
 0x6b9   : > { %2046 = vmatprep.subr.mxu1 %v1647_v40 }
 0x6ba   : > { %2047 = vmatpush3.msra.mxu1 %v1647_v40 }
 0x6bd   : > { %v2034_v25 = vpop.f32.mrf.mxu1 }
 0x6be   : > { %v1454_v47 = vadd.f32 %v2034_v25, %v1907_v41 }
 0x6bf   : > { %v1445_v11 = vpop.f32.mrf.mxu1 }
 0x6c0   : > { %v1474_v23 = vmul.f32 0.70710677, %v1454_v47  ;;  %v1446_v27 = vadd.f32 %v1907_v41, %v1445_v11  ;;  %v1466_v19 = vmul.f32 0.5, %v1454_v47  ;;  %v1646_v11 = vld [vmem:[%s2772_s10] sm:$0xff] }
 0x6c1   : > { %v2131_v48 = vpop.eup %2130  ;;  %v2035_v49 = vpop.f32.mrf.mxu1  ;;  %2048 = vmatprep.subr.mxu1 %v1646_v11 }
 0x6c2   : > { %v2133_v5 = vpop.eup %2132  ;;  %v1472_v50 = vmul.f32 0.70710677, %v1446_v27  ;;  %v1457_v29 = vadd.f32 %v2035_v49, %v1907_v41  ;;  %v1484_v30 = vadd.f32 1.0, %v2131_v48  ;;  %2138 = verf.f32 %v1474_v23  ;;  %2049 = vmatpush3.msra.mxu1 %v1646_v11  ;;  %v1806_v11 = vld [vmem:[%s2774_s12 + $0x30] sm:$0xff] }
 0x6c3   : > { %v2135_v51 = vpop.eup %2134  ;;  %v1448_v14 = vpop.f32.mrf.mxu1  ;;  %v1486_v55 = vadd.f32 1.0, %v2133_v5  ;;  %v1464_v32 = vmul.f32 0.5, %v1446_v27 }
 0x6c4   : > { %v1487_v52 = vadd.f32 1.0, %v2135_v51  ;;  %v1449_v53 = vadd.f32 %v1907_v41, %v1448_v14  ;;  %2140 = verf.f32 %v1472_v50  ;;  %v1475_v56 = vmul.f32 0.70710677, %v1457_v29 }
 0x6c5   : > { %v2137_v54 = vpop.eup %2136  ;;  %v1492_v1 = vmul.f32 %v1484_v30, %v1460_v35  ;;  %v1494_v3 = vmul.f32 %v1486_v55, %v1462_v59  ;;  %v1467_v26 = vmul.f32 0.5, %v1457_v29 }
 0x6c6   : > { %v1485_v62 = vadd.f32 1.0, %v2137_v54  ;;  %v1473_v39 = vmul.f32 0.70710677, %v1449_v53  ;;  %v1495_v63 = vmul.f32 %v1487_v52, %v1463_v20  ;;  %2142 = verf.f32 %v1475_v56 }
 0x6c7   : > { %v1465_v12 = vmul.f32 0.5, %v1449_v53 }
 0x6c8   : > { %v1493_v46 = vmul.f32 %v1485_v62, %v1461_v58  ;;  %2144 = verf.f32 %v1473_v39  ;;  %v1501_v7 = vpack.c.bf16 %v1495_v63, %v1494_v3 }
 0x6ca   : > { %v1500_v60 = vpack.c.bf16 %v1493_v46, %v1492_v1 }
 0x6cc   : > { %2038 = vmatprep.mubr.msk.bf16.mxu0 %vm678_vm1, %v1500_v60 }
 0x6cd   : > { %2039 = vmatmul.mubr.msk.bf16.vlgmr.msra.gmra.mxu0 %vm678_vm1, %v1501_v7 }
 0x6cf   : > { %v2139_v9 = vpop.eup %2138 }
 0x6d0   : > { %v1490_v15 = vadd.f32 1.0, %v2139_v9 }
 0x6d1   : > { %v2141_v21 = vpop.eup %2140 }
 0x6d2   : > { %v1488_v31 = vadd.f32 1.0, %v2141_v21  ;;  %v1498_v33 = vmul.f32 %v1490_v15, %v1466_v19  ;;  %v1919_v21 = vld [vmem:[%s2773_s11] ss:$0 sm:$0xff] }
 0x6d3   : > { %v2143_v57 = vpop.eup %2142 }
 0x6d4   : > { %v1491_v28 = vadd.f32 1.0, %v2143_v57  ;;  %v1496_v41 = vmul.f32 %v1488_v31, %v1464_v32  ;;  %v1802_v32 = vld [vmem:[%s2774_s12 + $0x10] sm:$0xff] }
 0x6d5   : > { %v2145_v24 = vpop.eup %2144 }
 0x6d6   : > { %v1489_v18 = vadd.f32 1.0, %v2145_v24  ;;  %v1499_v38 = vmul.f32 %v1491_v28, %v1467_v26  ;;  %v1803_v24 = vld [vmem:[%s2774_s12 + $0x18] sm:$0xff]  ;;  %v1801_v28 = vld [vmem:[%s2774_s12 + $0x8] sm:$0xff] }
 0x6d8   : > { %v1497_v22 = vmul.f32 %v1489_v18, %v1465_v12  ;;  %v1503_v37 = vpack.c.bf16 %v1499_v38, %v1498_v33  ;;  %v1805_v18 = vld [vmem:[%s2774_s12 + $0x28] sm:$0xff] }
 0x6da   : > { %v1502_v36 = vpack.c.bf16 %v1497_v22, %v1496_v41  ;;  %v1800_v22 = vld [vmem:[%s2774_s12] sm:$0xff] }
 0x6dc   : > { %2042 = vmatprep.mubr.msk.bf16.mxu0 %vm678_vm1, %v1502_v36  ;;  %v1804_v36 = vld [vmem:[%s2774_s12 + $0x20] sm:$0xff] }
 0x6dd   : > { %2043 = vmatmul.mubr.msk.bf16.gmra.mxu0 %vm678_vm1, %v1503_v37 }
 0x78d   : > { %v2040_v2 = vpop.f32.mrf.mxu0 }
 0x78f   : > { %v1558_v13 = vpop.f32.mrf.mxu0 }
 0x790   : > { %1597 = vrot.lane.b32.xlu0 %v1558_v13, %s2161_s16 }
 0x791   : > { %v2041_v42 = vpop.f32.mrf.mxu0 }
 0x793   : > { %v1561_v45 = vpop.f32.mrf.mxu0 }
 0x794   : > { %1635 = vrot.lane.b32.xlu0 %v1918_v44, %s2161_s16  ;;  %1599 = vrot.lane.b32.xlu1 %v1561_v45, %s2161_s16  ;;  %v1807_v45 = vld [vmem:[%s2774_s12 + $0x38] sm:$0xff] }
 0x798   : > { %1603 = vrot.lane.b32.xlu0 %v2041_v42, %s2161_s16  ;;  %1601 = vrot.lane.b32.xlu1 %v2040_v2, %s2161_s16 }
 0x79d   : > { %v2044_v61 = vpop.f32.mrf.mxu0 }
 0x79f   : > { %v1574_v43 = vpop.f32.mrf.mxu0 }
 0x7a0   : > { %1605 = vrot.lane.b32.xlu1 %v1574_v43, %s2161_s16 }
 0x7a1   : > { %v2045_v25 = vpop.f32.mrf.mxu0 }
 0x7a3   : > { %v1577_v47 = vpop.f32.mrf.mxu0 }
 0x7a4   : > { %1609 = vrot.lane.b32.xlu1 %v2044_v61, %s2161_s16  ;;  %1607 = vrot.lane.b32.xlu0 %v1577_v47, %s2161_s16 }
 0x7a8   : > { %1611 = vrot.lane.b32.xlu0 %v2045_v25, %s2161_s16 }
 0x802   : > { %v1598_v23 = vpop.permute.xlu0 %1597 }
 0x803   : > { %v1621_v27 = vadd.f32 %v1598_v23, %v2637_v4 }
 0x806   : > { %v1636_v48 = vpop.permute.xlu0 %1635  ;;  %v1600_v49 = vpop.permute.xlu1 %1599 }
 0x807   : > { %v1622_v5 = vadd.f32 %v1600_v49, %v2634_v34  ;;  %v1638_v51 = vadd.f32 %v1636_v48, %v1621_v27 }
 0x809   : > { %v1639_v50 = vadd.f32 %v1636_v48, %v1622_v5  ;;  %1663 = vrot.lane.b32.xlu1 %v1638_v51, %s2161_s16 }
 0x80a   : > { %v1604_v29 = vpop.permute.xlu0 %1603  ;;  %v1602_v14 = vpop.permute.xlu1 %1601 }
 0x80b   : > { %v1624_v30 = vadd.f32 %v1604_v29, %v2643_v8  ;;  %v1623_v52 = vadd.f32 %v1602_v14, %v2646_v0  ;;  %1665 = vrot.lane.b32.xlu0 %v1639_v50, %s2161_s16 }
 0x80d   : > { %v1641_v53 = vadd.f32 %v1636_v48, %v1624_v30  ;;  %v1640_v54 = vadd.f32 %v1636_v48, %v1623_v52 }
 0x80f   : > { %1667 = vrot.lane.b32.xlu1 %v1640_v54, %s2161_s16  ;;  %1669 = vrot.lane.b32.xlu0 %v1641_v53, %s2161_s16 }
 0x812   : > { %v1606_v4 = vpop.permute.xlu1 %1605 }
 0x813   : > { %v1625_v34 = vadd.f32 %v1606_v4, %v2655_v6 }
 0x815   : > { %v1642_v55 = vadd.f32 %v1636_v48, %v1625_v34 }
 0x816   : > { %v1610_v20 = vpop.permute.xlu1 %1609  ;;  %v1608_v56 = vpop.permute.xlu0 %1607 }
 0x817   : > { %v1627_v35 = vadd.f32 %v1610_v20, %v2661_v16  ;;  %v1626_v8 = vadd.f32 %v1608_v56, %v2652_v10  ;;  %1671 = vrot.lane.b32.xlu1 %v1642_v55, %s2161_s16 }
 0x819   : > { %v1644_v0 = vadd.f32 %v1636_v48, %v1627_v35  ;;  %v1643_v58 = vadd.f32 %v1636_v48, %v1626_v8 }
 0x81a   : > { %v1612_v62 = vpop.permute.xlu0 %1611 }
 0x81b   : > { %v1628_v39 = vadd.f32 %v1612_v62, %v2664_v17  ;;  %1675 = vrot.lane.b32.xlu1 %v1644_v0, %s2161_s16  ;;  %1673 = vrot.lane.b32.xlu0 %v1643_v58, %s2161_s16 }
 0x81d   : > { %v1645_v59 = vadd.f32 %v1636_v48, %v1628_v39 }
 0x81f   : > { %1677 = vrot.lane.b32.xlu0 %v1645_v59, %s2161_s16 }
 0x87b   : > { %v1664_v6 = vpop.permute.xlu1 %1663 }
 0x87c   : > { %2050 = vmatprep.mubr.msk.f32.mxu1 %vm678_vm1, %v1664_v6 }
 0x87d   : > { %v1666_v16 = vpop.permute.xlu0 %1665 }
 0x87e   : > { %2051 = vmatmul.mubr.msk.f32.vlgmr.msra.gmra.mxu1 %vm678_vm1, %v1666_v16 }
 0x881   : > { %v1668_v10 = vpop.permute.xlu1 %1667  ;;  %v1670_v63 = vpop.permute.xlu0 %1669 }
 0x882   : > { %2053 = vmatprep.mubr.msk.f32.mxu1 %vm678_vm1, %v1668_v10 }
 0x883   : > { %2054 = vmatmul.mubr.msk.f32.gmra.mxu1 %vm678_vm1, %v1670_v63 }
 0x889   : > { %v1672_v17 = vpop.permute.xlu1 %1671 }
 0x88a   : > { %2056 = vmatprep.mubr.msk.f32.mxu1 %vm678_vm1, %v1672_v17 }
 0x88d   : > { %v1676_v1 = vpop.permute.xlu1 %1675  ;;  %v1674_v46 = vpop.permute.xlu0 %1673 }
 0x88e   : > { %2057 = vmatmul.mubr.msk.f32.gmra.mxu1 %vm678_vm1, %v1674_v46 }
 0x88f   : > { %2059 = vmatprep.mubr.msk.f32.mxu1 %vm678_vm1, %v1676_v1 }
 0x891   : > { %v1678_v3 = vpop.permute.xlu0 %1677 }
 0x892   : > { %2060 = vmatmul.mubr.msk.f32.gmra.mxu1 %vm678_vm1, %v1678_v3 }
 0x93e   : > { %v2052_v60 = vpop.f32.mrf.mxu1 }
 0x93f   : > { %v1767_v15 = vadd.f32 %v2052_v60, %v1919_v21 }
 0x940   : > { %v1761_v7 = vpop.f32.mrf.mxu1 }
 0x941   : > { %v1762_v19 = vadd.f32 %v1919_v21, %v1761_v7  ;;  %v1809_v37 = vmul.f32 %v1801_v28, %v1767_v15 }
 0x943   : > { %v2055_v9 = vpop.f32.mrf.mxu1  ;;  %v1808_v61 = vmul.f32 %v1800_v22, %v1762_v19 }
 0x944   : > { %v1777_v31 = vadd.f32 %v2055_v9, %v1919_v21 }
 0x945   : > { %v1771_v57 = vpop.f32.mrf.mxu1 }
 0x946   : > { %v1772_v26 = vadd.f32 %v1919_v21, %v1771_v57  ;;  %v1811_v38 = vmul.f32 %v1803_v24, %v1777_v31 }
 0x948   : > { %v1810_v2 = vmul.f32 %v1802_v32, %v1772_v26  ;;  %v1817_v43 = vadd.f32 %v1811_v38, %v1809_v37 }
 0x94a   : > { %v1816_v23 = vadd.f32 %v1810_v2, %v1808_v61 }
 0x94e   : > { %v2058_v12 = vpop.f32.mrf.mxu1 }
 0x94f   : > { %v1787_v41 = vadd.f32 %v2058_v12, %v1919_v21 }
 0x950   : > { %v1781_v33 = vpop.f32.mrf.mxu1 }
 0x951   : > { %v1813_v13 = vmul.f32 %v1805_v18, %v1787_v41  ;;  %v1782_v42 = vadd.f32 %v1919_v21, %v1781_v33 }
 0x952   : > { %v2061_v44 = vpop.f32.mrf.mxu1 }
 0x953   : > { %v1812_v40 = vmul.f32 %v1804_v36, %v1782_v42  ;;  %v1797_v25 = vadd.f32 %v2061_v44, %v1919_v21  ;;  %v1819_v27 = vadd.f32 %v1817_v43, %v1813_v13 }
 0x954   : > { %v1791_v47 = vpop.f32.mrf.mxu1 }
 0x955   : > { %v1815_v48 = vmul.f32 %v1807_v45, %v1797_v25  ;;  %v1792_v49 = vadd.f32 %v1919_v21, %v1791_v47  ;;  %v1818_v5 = vadd.f32 %v1816_v23, %v1812_v40 }
 0x957   : > { %v1821_v51 = vadd.f32 %v1819_v27, %v1815_v48  ;;  %v1814_v50 = vmul.f32 %v1806_v11, %v1792_v49 }
 0x959   : > { %1823 = vst.msk [vmem:[%s440_s19 + $0x8] sm:$0xff] %vm468_vm0, %v1821_v51  ;;  %v1820_v29 = vadd.f32 %v1818_v5, %v1814_v50 }
 0x95b   : > { %1822 = vst.msk [vmem:[%s440_s19] sm:$0xff] %vm468_vm0, %v1820_v29 }
 0x95c PF: > { %s23_s25 = sadd.s32 1, %s2152_s25  }
 0x95d   : > { %p20_p4 = scmp.ge.s32.totalorder %s23_s25, 4  }
 0x95f   :  { %22 = sbr.rel (!%p20_p4) target bundleno = 1 (0x1), region = 102 }

</bundles_post_ra>
